<compile_context>
chip_gen: v5e
topology: v5e:2x2
jax: 0.10.0
libtpu: 0.0.40
codegen_flags: <defaults>
</compile_context>

<pallas_src>
import functools

import jax
import jax.numpy as jnp
from jax.experimental import pallas as pl
from jax.experimental.pallas import tpu as pltpu


def _layernorm(x, gamma, beta, eps=1e-5):
    mu = jnp.mean(x, axis=-1, keepdims=True)
    var = jnp.mean((x - mu) ** 2, axis=-1, keepdims=True)
    return (x - mu) * jax.lax.rsqrt(var + eps) * gamma + beta


def decoder_kernel(n_layers, n_heads,
                   x_ref, mask_ref,
                   wqkv_ref, bqkv_ref,
                   wo_ref, bo_ref,
                   g1_ref, be1_ref,
                   w1_ref, b1_ref, w2_ref, b2_ref,
                   g2_ref, be2_ref,
                   o_ref):
    _, S, D = x_ref.shape
    H = n_heads
    dh = D // H
    f32 = jnp.float32
    bf16 = jnp.bfloat16

    x0 = x_ref[0].astype(f32)          # (S, D) activation, carried across layers
    mask = mask_ref[...]               # (S, S) additive causal bias (0 / -1e30)

    def layer_body(_, x):
        x_bf = x.astype(bf16)

        # Fused QKV: one (S, D) x (D, 3D) bf16 MXU matmul, f32 accumulate.
        # 1/sqrt(dh) is already folded into the Q columns host-side.
        qkv = jnp.dot(x_bf, wqkv_ref[...],
                      preferred_element_type=f32) + bqkv_ref[...]

        # Head loop (H is small & static): only ONE (S, S) score tile is live
        # at a time, and the head-merge is fused into the output projection by
        # accumulating o_h @ Wo[h]  (Wo pre-reshaped to (H, dh, D) host-side),
        # so there is no transpose/reshape/concat relayout per layer.
        attn = jnp.zeros((S, D), f32)
        for h in range(H):
            q_h = qkv[:, h * dh:(h + 1) * dh].astype(bf16)
            k_h = qkv[:, D + h * dh:D + (h + 1) * dh].astype(bf16)
            v_h = qkv[:, 2 * D + h * dh:2 * D + (h + 1) * dh].astype(bf16)

            # q @ k^T without an explicit transpose (TRANS_B dot_general).
            s = jax.lax.dot_general(q_h, k_h, (((1,), (1,)), ((), ())),
                                    preferred_element_type=f32)
            s = s + mask
            m = jnp.max(s, axis=-1, keepdims=True)
            p = jnp.exp(s - m)
            denom = jnp.sum(p, axis=-1, keepdims=True)

            o_h = jnp.dot(p.astype(bf16), v_h, preferred_element_type=f32)
            o_h = o_h * pl.reciprocal(denom, approx=True)   # EUP, off VPU path

            attn = attn + jnp.dot(o_h.astype(bf16), wo_ref[h],
                                  preferred_element_type=f32)
        attn = attn + bo_ref[...]

        # Residual + LayerNorm 1 (f32)
        h1 = _layernorm(x + attn, g1_ref[...], be1_ref[...])

        # FFN: Linear -> ReLU -> Linear, bf16 matmuls, f32 accumulate.
        ff = jnp.dot(h1.astype(bf16), w1_ref[...],
                     preferred_element_type=f32) + b1_ref[...]
        ff = jnp.maximum(ff, 0.0)
        ff = jnp.dot(ff.astype(bf16), w2_ref[...],
                     preferred_element_type=f32) + b2_ref[...]

        # Residual + LayerNorm 2 (f32)
        return _layernorm(h1 + ff, g2_ref[...], be2_ref[...])

    y = jax.lax.fori_loop(0, n_layers, layer_body, x0)
    o_ref[0] = y.astype(o_ref.dtype)    # single lane-dense HBM writeback


def init_decoder_layer_params(key, d_model, d_ff):
    """Deterministic synthetic parameters for one (shared) DecoderLayer."""
    ks = jax.random.split(key, 6)
    sd = 0.02
    return [
        jax.random.normal(ks[0], (d_model, d_model), jnp.float32) * sd,  # Wq
        jnp.zeros((1, d_model), jnp.float32),                            # bq
        jax.random.normal(ks[1], (d_model, d_model), jnp.float32) * sd,  # Wk
        jnp.zeros((1, d_model), jnp.float32),                            # bk
        jax.random.normal(ks[2], (d_model, d_model), jnp.float32) * sd,  # Wv
        jnp.zeros((1, d_model), jnp.float32),                            # bv
        jax.random.normal(ks[3], (d_model, d_model), jnp.float32) * sd,  # Wo
        jnp.zeros((1, d_model), jnp.float32),                            # bo
        jnp.ones((1, d_model), jnp.float32),                             # LN1 gamma
        jnp.zeros((1, d_model), jnp.float32),                            # LN1 beta
        jax.random.normal(ks[4], (d_model, d_ff), jnp.float32) * sd,     # W1
        jnp.zeros((1, d_ff), jnp.float32),                               # b1
        jax.random.normal(ks[5], (d_ff, d_model), jnp.float32) * sd,     # W2
        jnp.zeros((1, d_model), jnp.float32),                            # b2
        jnp.ones((1, d_model), jnp.float32),                             # LN2 gamma
        jnp.zeros((1, d_model), jnp.float32),                            # LN2 beta
    ]


def _nbytes(a):
    return int(a.size) * a.dtype.itemsize


def decoder_forward(x, params, n_layers, n_heads):
    """Applies the same decoder layer n_layers times (shared weights) in a
    single pallas_call with grid=(batch,); the layer loop runs in-kernel."""
    B, S, D = x.shape
    (wq, bq, wk, bk, wv, bv, wo, bo,
     g1, be1, w1, b1, w2, b2, g2, be2) = params
    d_ff = w1.shape[1]
    dh = D // n_heads

    # Host-side preprocessing (done once, outside the kernel):
    #  * fold 1/sqrt(dh) into the Q projection,
    #  * fuse QKV weights/biases -> one wide matmul,
    #  * reshape Wo to head-major (H, dh, D) so the head-merge fuses into the
    #    output projection,
    #  * cast matmul weights to bf16 (biases / LN params stay f32),
    #  * build the additive causal-mask bias once.
    scale = 1.0 / jnp.sqrt(jnp.float32(dh))
    wqkv = jnp.concatenate([wq * scale, wk, wv], axis=1).astype(jnp.bfloat16)
    bqkv = jnp.concatenate([bq * scale, bk, bv], axis=1)            # (1, 3D) f32
    wo_h = wo.reshape(n_heads, dh, D).astype(jnp.bfloat16)          # (H, dh, D)
    causal = jnp.tril(jnp.ones((S, S), dtype=bool))
    mask_bias = jnp.where(causal, 0.0, -1e30).astype(jnp.float32)   # (S, S)

    consts = [mask_bias, wqkv, bqkv, wo_h, bo, g1, be1,
              w1.astype(jnp.bfloat16), b1, w2.astype(jnp.bfloat16), b2, g2, be2]

    kernel = functools.partial(decoder_kernel, n_layers, n_heads)

    # Constant operands: whole array resident in VMEM, single-buffered.
    vmem_spec = pl.BlockSpec(memory_space=pltpu.MemorySpace.VMEM)
    in_specs = [pl.BlockSpec((1, S, D), lambda b: (b, 0, 0))]
    in_specs += [vmem_spec] * len(consts)

    # Size the VMEM limit from what is actually resident (weights + mask +
    # pipelined activation blocks), capped at 7/8 of this chip's capacity
    # (~112 MiB on v5e/v6e, ~56 MiB on v7x).
    resident = sum(_nbytes(a) for a in consts)
    block_bytes = 2 * 2 * S * D * x.dtype.itemsize          # in+out, double-buffered
    needed = resident + block_bytes + (1 << 20)
    try:
        cap = int(pltpu.get_tpu_info().vmem_capacity_bytes)
    except Exception:
        cap = 64 * 1024 * 1024
    vmem_limit = int(min(cap * 7 // 8, max(4 * needed, 32 * 1024 * 1024)))

    flops_layer = (2 * S * D * 3 * D          # fused QKV
                   + 4 * S * S * D            # QK^T + PV over all heads
                   + 2 * S * D * D            # head-merged output projection
                   + 4 * S * D * d_ff)        # FFN
    cost = pl.CostEstimate(
        flops=B * n_layers * flops_layer,
        transcendentals=B * n_layers * (n_heads * S * S + n_heads * S + 4 * S),
        bytes_accessed=2 * B * S * D * x.dtype.itemsize
                       + sum(_nbytes(a) for a in consts),
    )

    return pl.pallas_call(
        kernel,
        out_shape=jax.ShapeDtypeStruct((B, S, D), x.dtype),
        grid=(B,),
        in_specs=in_specs,
        out_specs=pl.BlockSpec((1, S, D), lambda b: (b, 0, 0)),
        compiler_params=pltpu.CompilerParams(
            dimension_semantics=("parallel",),
            vmem_limit_bytes=vmem_limit,
        ),
        cost_estimate=cost,
    )(x, *consts)


def _reference(x, params, n_layers, n_heads):
    """Pure-JAX f32 reference for correctness checking."""
    (wq, bq, wk, bk, wv, bv, wo, bo,
     g1, be1, w1, b1, w2, b2, g2, be2) = params
    B, S, D = x.shape
    dh = D // n_heads
    causal = jnp.tril(jnp.ones((S, S), bool))

    def ln(h, g, b):
        mu = h.mean(-1, keepdims=True)
        var = ((h - mu) ** 2).mean(-1, keepdims=True)
        return (h - mu) / jnp.sqrt(var + 1e-5) * g + b

    def layer(h):
        q = (h @ wq + bq).reshape(B, S, n_heads, dh)
        k = (h @ wk + bk).reshape(B, S, n_heads, dh)
        v = (h @ wv + bv).reshape(B, S, n_heads, dh)
        s = jnp.einsum('bqhd,bkhd->bhqk', q, k) / jnp.sqrt(dh)
        s = jnp.where(causal, s, -1e30)
        p = jax.nn.softmax(s, axis=-1)
        a = jnp.einsum('bhqk,bkhd->bqhd', p, v).reshape(B, S, D)
        a = a @ wo + bo
        h1 = ln(h + a, g1, be1)
        ff = jnp.maximum(h1 @ w1 + b1, 0.0) @ w2 + b2
        return ln(h1 + ff, g2, be2)

    for _ in range(n_layers):
        x = layer(x)
    return x


if __name__ == "__main__":
    B, S, D = 2, 16, 128           # D multiple of 128 -> lane-dense stores
    N_HEADS = 4                    # dh = 32
    D_FF = 256
    N_LAYERS = 3

    key = jax.random.PRNGKey(0)
    kx, kp = jax.random.split(key)
    x = jax.random.normal(kx, (B, S, D), jnp.float32)
    params = init_decoder_layer_params(kp, D, D_FF)

    out = decoder_forward(x, params, N_LAYERS, N_HEADS)
    out = jax.block_until_ready(out)
    assert out.shape == (B, S, D)
    assert jnp.all(jnp.isfinite(out))

    ref = _reference(x, params, N_LAYERS, N_HEADS)
    assert jnp.allclose(out, ref, rtol=2e-2, atol=2e-2), (
        float(jnp.max(jnp.abs(out - ref))))

    print("KERNEL_OK")
</pallas_src>

<mosaic_0001>
module attributes {stable_mosaic.version = 11 : i64} {
  func.func @decoder_kernel(%arg0: i32, %arg1: memref<1x16x128xf32, #tpu.memory_space<vmem>>, %arg2: memref<16x16xf32, #tpu.memory_space<vmem>>, %arg3: memref<128x384xbf16, #tpu.memory_space<vmem>>, %arg4: memref<1x384xf32, #tpu.memory_space<vmem>>, %arg5: memref<4x32x128xbf16, #tpu.memory_space<vmem>>, %arg6: memref<1x128xf32, #tpu.memory_space<vmem>>, %arg7: memref<1x128xf32, #tpu.memory_space<vmem>>, %arg8: memref<1x128xf32, #tpu.memory_space<vmem>>, %arg9: memref<128x256xbf16, #tpu.memory_space<vmem>>, %arg10: memref<1x256xf32, #tpu.memory_space<vmem>>, %arg11: memref<256x128xbf16, #tpu.memory_space<vmem>>, %arg12: memref<1x128xf32, #tpu.memory_space<vmem>>, %arg13: memref<1x128xf32, #tpu.memory_space<vmem>>, %arg14: memref<1x128xf32, #tpu.memory_space<vmem>>, %arg15: memref<1x16x128xf32, #tpu.memory_space<vmem>>) attributes {dimension_semantics = [#tpu.dimension_semantics<parallel>], iteration_bounds = array<i64: 2>, scalar_prefetch = 0 : i64, scratch_operands = 0 : i64, tpu.core_type = #tpu.core_type<tc>, window_params = [{transform_indices = @transform_0, window_bounds = array<i64: 1, 16, 128>}, {pipeline_mode = #tpu.pipeline_mode<synchronous>, transform_indices = @transform_1, window_bounds = array<i64: 16, 16>}, {pipeline_mode = #tpu.pipeline_mode<synchronous>, transform_indices = @transform_2, window_bounds = array<i64: 128, 384>}, {pipeline_mode = #tpu.pipeline_mode<synchronous>, transform_indices = @transform_3, window_bounds = array<i64: 1, 384>}, {pipeline_mode = #tpu.pipeline_mode<synchronous>, transform_indices = @transform_4, window_bounds = array<i64: 4, 32, 128>}, {pipeline_mode = #tpu.pipeline_mode<synchronous>, transform_indices = @transform_5, window_bounds = array<i64: 1, 128>}, {pipeline_mode = #tpu.pipeline_mode<synchronous>, transform_indices = @transform_6, window_bounds = array<i64: 1, 128>}, {pipeline_mode = #tpu.pipeline_mode<synchronous>, transform_indices = @transform_7, window_bounds = array<i64: 1, 128>}, {pipeline_mode = #tpu.pipeline_mode<synchronous>, transform_indices = @transform_8, window_bounds = array<i64: 128, 256>}, {pipeline_mode = #tpu.pipeline_mode<synchronous>, transform_indices = @transform_9, window_bounds = array<i64: 1, 256>}, {pipeline_mode = #tpu.pipeline_mode<synchronous>, transform_indices = @transform_10, window_bounds = array<i64: 256, 128>}, {pipeline_mode = #tpu.pipeline_mode<synchronous>, transform_indices = @transform_11, window_bounds = array<i64: 1, 128>}, {pipeline_mode = #tpu.pipeline_mode<synchronous>, transform_indices = @transform_12, window_bounds = array<i64: 1, 128>}, {pipeline_mode = #tpu.pipeline_mode<synchronous>, transform_indices = @transform_13, window_bounds = array<i64: 1, 128>}, {transform_indices = @transform_14, window_bounds = array<i64: 1, 16, 128>}]} {
    %c0 = arith.constant 0 : index
    %c0_0 = arith.constant 0 : index
    %c0_1 = arith.constant 0 : index
    %0 = vector.load %arg1[%c0, %c0_0, %c0_1] : memref<1x16x128xf32, #tpu.memory_space<vmem>>, vector<1x16x128xf32>
    %1 = vector.shape_cast %0 : vector<1x16x128xf32> to vector<16x128xf32>
    %c0_2 = arith.constant 0 : index
    %c0_3 = arith.constant 0 : index
    %2 = vector.load %arg2[%c0_2, %c0_3] : memref<16x16xf32, #tpu.memory_space<vmem>>, vector<16x16xf32>
    %c0_i32 = arith.constant 0 : i32
    %c3_i32 = arith.constant 3 : i32
    %3 = arith.addi %c0_i32, %c3_i32 : i32
    %c1_i32 = arith.constant 1 : i32
    %4 = scf.for %arg16 = %c0_i32 to %3 step %c1_i32 iter_args(%arg17 = %1) -> (vector<16x128xf32>)  : i32 {
      %8 = arith.truncf %arg17 : vector<16x128xf32> to vector<16x128xbf16>
      %c0_7 = arith.constant 0 : index
      %c0_8 = arith.constant 0 : index
      %9 = vector.load %arg3[%c0_7, %c0_8] : memref<128x384xbf16, #tpu.memory_space<vmem>>, vector<128x384xbf16>
      %cst = arith.constant dense<0.000000e+00> : vector<16x384xf32>
      %10 = tpu.matmul %8, %9, %cst {dimension_numbers = #tpu.dot_dimension_numbers<[1], [0], [0], [1], [0, 0, 1, 1], [], []>} : vector<16x128xbf16>, vector<128x384xbf16>, vector<16x384xf32> -> vector<16x384xf32>
      %c0_9 = arith.constant 0 : index
      %c0_10 = arith.constant 0 : index
      %11 = vector.load %arg4[%c0_9, %c0_10] : memref<1x384xf32, #tpu.memory_space<vmem>>, vector<1x384xf32>
      %12 = vector.broadcast %11 : vector<1x384xf32> to vector<16x384xf32>
      %13 = arith.addf %10, %12 : vector<16x384xf32>
      %cst_11 = arith.constant 0.000000e+00 : f32
      %14 = vector.broadcast %cst_11 : f32 to vector<16x128xf32>
      %15 = vector.extract_strided_slice %13 {offsets = [0, 0], sizes = [16, 32], strides = [1, 1]} : vector<16x384xf32> to vector<16x32xf32>
      %16 = arith.truncf %15 : vector<16x32xf32> to vector<16x32xbf16>
      %17 = vector.extract_strided_slice %13 {offsets = [0, 128], sizes = [16, 32], strides = [1, 1]} : vector<16x384xf32> to vector<16x32xf32>
      %18 = arith.truncf %17 : vector<16x32xf32> to vector<16x32xbf16>
      %19 = vector.extract_strided_slice %13 {offsets = [0, 256], sizes = [16, 32], strides = [1, 1]} : vector<16x384xf32> to vector<16x32xf32>
      %20 = arith.truncf %19 : vector<16x32xf32> to vector<16x32xbf16>
      %cst_12 = arith.constant dense<0.000000e+00> : vector<16x16xf32>
      %21 = tpu.matmul %16, %18, %cst_12 {dimension_numbers = #tpu.dot_dimension_numbers<[1], [1], [0], [0], [0, 0, 1, 0], [], []>} : vector<16x32xbf16>, vector<16x32xbf16>, vector<16x16xf32> -> vector<16x16xf32>
      %22 = arith.addf %21, %2 : vector<16x16xf32>
      %cst_13 = arith.constant dense<0xFF800000> : vector<16xf32>
      %23 = vector.multi_reduction <maximumf>, %22, %cst_13 [1] : vector<16x16xf32> to vector<16xf32>
      %24 = vector.shape_cast %23 : vector<16xf32> to vector<16x1xf32>
      %25 = vector.broadcast %24 : vector<16x1xf32> to vector<16x16xf32>
      %26 = arith.subf %22, %25 : vector<16x16xf32>
      %27 = math.exp %26 : vector<16x16xf32>
      %cst_14 = arith.constant dense<0.000000e+00> : vector<16xf32>
      %28 = vector.multi_reduction <add>, %27, %cst_14 [1] : vector<16x16xf32> to vector<16xf32>
      %29 = vector.shape_cast %28 : vector<16xf32> to vector<16x1xf32>
      %30 = arith.truncf %27 : vector<16x16xf32> to vector<16x16xbf16>
      %cst_15 = arith.constant dense<0.000000e+00> : vector<16x32xf32>
      %31 = tpu.matmul %30, %20, %cst_15 {dimension_numbers = #tpu.dot_dimension_numbers<[1], [0], [0], [1], [0, 0, 1, 1], [], []>} : vector<16x16xbf16>, vector<16x32xbf16>, vector<16x32xf32> -> vector<16x32xf32>
      %32 = tpu.reciprocal %29 {approx = true} : vector<16x1xf32> -> vector<16x1xf32>
      %33 = vector.broadcast %32 : vector<16x1xf32> to vector<16x32xf32>
      %34 = arith.mulf %31, %33 : vector<16x32xf32>
      %35 = arith.truncf %34 : vector<16x32xf32> to vector<16x32xbf16>
      %c0_16 = arith.constant 0 : index
      %c0_17 = arith.constant 0 : index
      %c0_18 = arith.constant 0 : index
      %36 = vector.load %arg5[%c0_16, %c0_17, %c0_18] : memref<4x32x128xbf16, #tpu.memory_space<vmem>>, vector<1x32x128xbf16>
      %37 = vector.shape_cast %36 : vector<1x32x128xbf16> to vector<32x128xbf16>
      %cst_19 = arith.constant dense<0.000000e+00> : vector<16x128xf32>
      %38 = tpu.matmul %35, %37, %cst_19 {dimension_numbers = #tpu.dot_dimension_numbers<[1], [0], [0], [1], [0, 0, 1, 1], [], []>} : vector<16x32xbf16>, vector<32x128xbf16>, vector<16x128xf32> -> vector<16x128xf32>
      %39 = arith.addf %14, %38 : vector<16x128xf32>
      %40 = vector.extract_strided_slice %13 {offsets = [0, 32], sizes = [16, 32], strides = [1, 1]} : vector<16x384xf32> to vector<16x32xf32>
      %41 = arith.truncf %40 : vector<16x32xf32> to vector<16x32xbf16>
      %42 = vector.extract_strided_slice %13 {offsets = [0, 160], sizes = [16, 32], strides = [1, 1]} : vector<16x384xf32> to vector<16x32xf32>
      %43 = arith.truncf %42 : vector<16x32xf32> to vector<16x32xbf16>
      %44 = vector.extract_strided_slice %13 {offsets = [0, 288], sizes = [16, 32], strides = [1, 1]} : vector<16x384xf32> to vector<16x32xf32>
      %45 = arith.truncf %44 : vector<16x32xf32> to vector<16x32xbf16>
      %cst_20 = arith.constant dense<0.000000e+00> : vector<16x16xf32>
      %46 = tpu.matmul %41, %43, %cst_20 {dimension_numbers = #tpu.dot_dimension_numbers<[1], [1], [0], [0], [0, 0, 1, 0], [], []>} : vector<16x32xbf16>, vector<16x32xbf16>, vector<16x16xf32> -> vector<16x16xf32>
      %47 = arith.addf %46, %2 : vector<16x16xf32>
      %cst_21 = arith.constant dense<0xFF800000> : vector<16xf32>
      %48 = vector.multi_reduction <maximumf>, %47, %cst_21 [1] : vector<16x16xf32> to vector<16xf32>
      %49 = vector.shape_cast %48 : vector<16xf32> to vector<16x1xf32>
      %50 = vector.broadcast %49 : vector<16x1xf32> to vector<16x16xf32>
      %51 = arith.subf %47, %50 : vector<16x16xf32>
      %52 = math.exp %51 : vector<16x16xf32>
      %cst_22 = arith.constant dense<0.000000e+00> : vector<16xf32>
      %53 = vector.multi_reduction <add>, %52, %cst_22 [1] : vector<16x16xf32> to vector<16xf32>
      %54 = vector.shape_cast %53 : vector<16xf32> to vector<16x1xf32>
      %55 = arith.truncf %52 : vector<16x16xf32> to vector<16x16xbf16>
      %cst_23 = arith.constant dense<0.000000e+00> : vector<16x32xf32>
      %56 = tpu.matmul %55, %45, %cst_23 {dimension_numbers = #tpu.dot_dimension_numbers<[1], [0], [0], [1], [0, 0, 1, 1], [], []>} : vector<16x16xbf16>, vector<16x32xbf16>, vector<16x32xf32> -> vector<16x32xf32>
      %57 = tpu.reciprocal %54 {approx = true} : vector<16x1xf32> -> vector<16x1xf32>
      %58 = vector.broadcast %57 : vector<16x1xf32> to vector<16x32xf32>
      %59 = arith.mulf %56, %58 : vector<16x32xf32>
      %60 = arith.truncf %59 : vector<16x32xf32> to vector<16x32xbf16>
      %c1 = arith.constant 1 : index
      %c0_24 = arith.constant 0 : index
      %c0_25 = arith.constant 0 : index
      %61 = vector.load %arg5[%c1, %c0_24, %c0_25] : memref<4x32x128xbf16, #tpu.memory_space<vmem>>, vector<1x32x128xbf16>
      %62 = vector.shape_cast %61 : vector<1x32x128xbf16> to vector<32x128xbf16>
      %cst_26 = arith.constant dense<0.000000e+00> : vector<16x128xf32>
      %63 = tpu.matmul %60, %62, %cst_26 {dimension_numbers = #tpu.dot_dimension_numbers<[1], [0], [0], [1], [0, 0, 1, 1], [], []>} : vector<16x32xbf16>, vector<32x128xbf16>, vector<16x128xf32> -> vector<16x128xf32>
      %64 = arith.addf %39, %63 : vector<16x128xf32>
      %65 = vector.extract_strided_slice %13 {offsets = [0, 64], sizes = [16, 32], strides = [1, 1]} : vector<16x384xf32> to vector<16x32xf32>
      %66 = arith.truncf %65 : vector<16x32xf32> to vector<16x32xbf16>
      %67 = vector.extract_strided_slice %13 {offsets = [0, 192], sizes = [16, 32], strides = [1, 1]} : vector<16x384xf32> to vector<16x32xf32>
      %68 = arith.truncf %67 : vector<16x32xf32> to vector<16x32xbf16>
      %69 = vector.extract_strided_slice %13 {offsets = [0, 320], sizes = [16, 32], strides = [1, 1]} : vector<16x384xf32> to vector<16x32xf32>
      %70 = arith.truncf %69 : vector<16x32xf32> to vector<16x32xbf16>
      %cst_27 = arith.constant dense<0.000000e+00> : vector<16x16xf32>
      %71 = tpu.matmul %66, %68, %cst_27 {dimension_numbers = #tpu.dot_dimension_numbers<[1], [1], [0], [0], [0, 0, 1, 0], [], []>} : vector<16x32xbf16>, vector<16x32xbf16>, vector<16x16xf32> -> vector<16x16xf32>
      %72 = arith.addf %71, %2 : vector<16x16xf32>
      %cst_28 = arith.constant dense<0xFF800000> : vector<16xf32>
      %73 = vector.multi_reduction <maximumf>, %72, %cst_28 [1] : vector<16x16xf32> to vector<16xf32>
      %74 = vector.shape_cast %73 : vector<16xf32> to vector<16x1xf32>
      %75 = vector.broadcast %74 : vector<16x1xf32> to vector<16x16xf32>
      %76 = arith.subf %72, %75 : vector<16x16xf32>
      %77 = math.exp %76 : vector<16x16xf32>
      %cst_29 = arith.constant dense<0.000000e+00> : vector<16xf32>
      %78 = vector.multi_reduction <add>, %77, %cst_29 [1] : vector<16x16xf32> to vector<16xf32>
      %79 = vector.shape_cast %78 : vector<16xf32> to vector<16x1xf32>
      %80 = arith.truncf %77 : vector<16x16xf32> to vector<16x16xbf16>
      %cst_30 = arith.constant dense<0.000000e+00> : vector<16x32xf32>
      %81 = tpu.matmul %80, %70, %cst_30 {dimension_numbers = #tpu.dot_dimension_numbers<[1], [0], [0], [1], [0, 0, 1, 1], [], []>} : vector<16x16xbf16>, vector<16x32xbf16>, vector<16x32xf32> -> vector<16x32xf32>
      %82 = tpu.reciprocal %79 {approx = true} : vector<16x1xf32> -> vector<16x1xf32>
      %83 = vector.broadcast %82 : vector<16x1xf32> to vector<16x32xf32>
      %84 = arith.mulf %81, %83 : vector<16x32xf32>
      %85 = arith.truncf %84 : vector<16x32xf32> to vector<16x32xbf16>
      %c2 = arith.constant 2 : index
      %c0_31 = arith.constant 0 : index
      %c0_32 = arith.constant 0 : index
      %86 = vector.load %arg5[%c2, %c0_31, %c0_32] : memref<4x32x128xbf16, #tpu.memory_space<vmem>>, vector<1x32x128xbf16>
      %87 = vector.shape_cast %86 : vector<1x32x128xbf16> to vector<32x128xbf16>
      %cst_33 = arith.constant dense<0.000000e+00> : vector<16x128xf32>
      %88 = tpu.matmul %85, %87, %cst_33 {dimension_numbers = #tpu.dot_dimension_numbers<[1], [0], [0], [1], [0, 0, 1, 1], [], []>} : vector<16x32xbf16>, vector<32x128xbf16>, vector<16x128xf32> -> vector<16x128xf32>
      %89 = arith.addf %64, %88 : vector<16x128xf32>
      %90 = vector.extract_strided_slice %13 {offsets = [0, 96], sizes = [16, 32], strides = [1, 1]} : vector<16x384xf32> to vector<16x32xf32>
      %91 = arith.truncf %90 : vector<16x32xf32> to vector<16x32xbf16>
      %92 = vector.extract_strided_slice %13 {offsets = [0, 224], sizes = [16, 32], strides = [1, 1]} : vector<16x384xf32> to vector<16x32xf32>
      %93 = arith.truncf %92 : vector<16x32xf32> to vector<16x32xbf16>
      %94 = vector.extract_strided_slice %13 {offsets = [0, 352], sizes = [16, 32], strides = [1, 1]} : vector<16x384xf32> to vector<16x32xf32>
      %95 = arith.truncf %94 : vector<16x32xf32> to vector<16x32xbf16>
      %cst_34 = arith.constant dense<0.000000e+00> : vector<16x16xf32>
      %96 = tpu.matmul %91, %93, %cst_34 {dimension_numbers = #tpu.dot_dimension_numbers<[1], [1], [0], [0], [0, 0, 1, 0], [], []>} : vector<16x32xbf16>, vector<16x32xbf16>, vector<16x16xf32> -> vector<16x16xf32>
      %97 = arith.addf %96, %2 : vector<16x16xf32>
      %cst_35 = arith.constant dense<0xFF800000> : vector<16xf32>
      %98 = vector.multi_reduction <maximumf>, %97, %cst_35 [1] : vector<16x16xf32> to vector<16xf32>
      %99 = vector.shape_cast %98 : vector<16xf32> to vector<16x1xf32>
      %100 = vector.broadcast %99 : vector<16x1xf32> to vector<16x16xf32>
      %101 = arith.subf %97, %100 : vector<16x16xf32>
      %102 = math.exp %101 : vector<16x16xf32>
      %cst_36 = arith.constant dense<0.000000e+00> : vector<16xf32>
      %103 = vector.multi_reduction <add>, %102, %cst_36 [1] : vector<16x16xf32> to vector<16xf32>
      %104 = vector.shape_cast %103 : vector<16xf32> to vector<16x1xf32>
      %105 = arith.truncf %102 : vector<16x16xf32> to vector<16x16xbf16>
      %cst_37 = arith.constant dense<0.000000e+00> : vector<16x32xf32>
      %106 = tpu.matmul %105, %95, %cst_37 {dimension_numbers = #tpu.dot_dimension_numbers<[1], [0], [0], [1], [0, 0, 1, 1], [], []>} : vector<16x16xbf16>, vector<16x32xbf16>, vector<16x32xf32> -> vector<16x32xf32>
      %107 = tpu.reciprocal %104 {approx = true} : vector<16x1xf32> -> vector<16x1xf32>
      %108 = vector.broadcast %107 : vector<16x1xf32> to vector<16x32xf32>
      %109 = arith.mulf %106, %108 : vector<16x32xf32>
      %110 = arith.truncf %109 : vector<16x32xf32> to vector<16x32xbf16>
      %c3 = arith.constant 3 : index
      %c0_38 = arith.constant 0 : index
      %c0_39 = arith.constant 0 : index
      %111 = vector.load %arg5[%c3, %c0_38, %c0_39] : memref<4x32x128xbf16, #tpu.memory_space<vmem>>, vector<1x32x128xbf16>
      %112 = vector.shape_cast %111 : vector<1x32x128xbf16> to vector<32x128xbf16>
      %cst_40 = arith.constant dense<0.000000e+00> : vector<16x128xf32>
      %113 = tpu.matmul %110, %112, %cst_40 {dimension_numbers = #tpu.dot_dimension_numbers<[1], [0], [0], [1], [0, 0, 1, 1], [], []>} : vector<16x32xbf16>, vector<32x128xbf16>, vector<16x128xf32> -> vector<16x128xf32>
      %114 = arith.addf %89, %113 : vector<16x128xf32>
      %c0_41 = arith.constant 0 : index
      %c0_42 = arith.constant 0 : index
      %115 = vector.load %arg6[%c0_41, %c0_42] : memref<1x128xf32, #tpu.memory_space<vmem>>, vector<1x128xf32>
      %116 = vector.broadcast %115 : vector<1x128xf32> to vector<16x128xf32>
      %117 = arith.addf %114, %116 : vector<16x128xf32>
      %118 = arith.addf %arg17, %117 : vector<16x128xf32>
      %c0_43 = arith.constant 0 : index
      %c0_44 = arith.constant 0 : index
      %119 = vector.load %arg7[%c0_43, %c0_44] : memref<1x128xf32, #tpu.memory_space<vmem>>, vector<1x128xf32>
      %c0_45 = arith.constant 0 : index
      %c0_46 = arith.constant 0 : index
      %120 = vector.load %arg8[%c0_45, %c0_46] : memref<1x128xf32, #tpu.memory_space<vmem>>, vector<1x128xf32>
      %cst_47 = arith.constant dense<0.000000e+00> : vector<16xf32>
      %121 = vector.multi_reduction <add>, %118, %cst_47 [1] : vector<16x128xf32> to vector<16xf32>
      %122 = vector.shape_cast %121 : vector<16xf32> to vector<16x1xf32>
      %cst_48 = arith.constant 1.280000e+02 : f32
      %123 = vector.broadcast %cst_48 : f32 to vector<16x1xf32>
      %124 = arith.divf %122, %123 : vector<16x1xf32>
      %125 = vector.broadcast %124 : vector<16x1xf32> to vector<16x128xf32>
      %126 = arith.subf %118, %125 : vector<16x128xf32>
      %127 = arith.mulf %126, %126 : vector<16x128xf32>
      %cst_49 = arith.constant dense<0.000000e+00> : vector<16xf32>
      %128 = vector.multi_reduction <add>, %127, %cst_49 [1] : vector<16x128xf32> to vector<16xf32>
      %129 = vector.shape_cast %128 : vector<16xf32> to vector<16x1xf32>
      %cst_50 = arith.constant 1.280000e+02 : f32
      %130 = vector.broadcast %cst_50 : f32 to vector<16x1xf32>
      %131 = arith.divf %129, %130 : vector<16x1xf32>
      %132 = vector.broadcast %124 : vector<16x1xf32> to vector<16x128xf32>
      %133 = arith.subf %118, %132 : vector<16x128xf32>
      %cst_51 = arith.constant 9.99999974E-6 : f32
      %134 = vector.broadcast %cst_51 : f32 to vector<16x1xf32>
      %135 = arith.addf %131, %134 : vector<16x1xf32>
      %136 = math.rsqrt %135 : vector<16x1xf32>
      %137 = vector.broadcast %136 : vector<16x1xf32> to vector<16x128xf32>
      %138 = arith.mulf %133, %137 : vector<16x128xf32>
      %139 = vector.broadcast %119 : vector<1x128xf32> to vector<16x128xf32>
      %140 = arith.mulf %138, %139 : vector<16x128xf32>
      %141 = vector.broadcast %120 : vector<1x128xf32> to vector<16x128xf32>
      %142 = arith.addf %140, %141 : vector<16x128xf32>
      %143 = arith.truncf %142 : vector<16x128xf32> to vector<16x128xbf16>
      %c0_52 = arith.constant 0 : index
      %c0_53 = arith.constant 0 : index
      %144 = vector.load %arg9[%c0_52, %c0_53] : memref<128x256xbf16, #tpu.memory_space<vmem>>, vector<128x256xbf16>
      %cst_54 = arith.constant dense<0.000000e+00> : vector<16x256xf32>
      %145 = tpu.matmul %143, %144, %cst_54 {dimension_numbers = #tpu.dot_dimension_numbers<[1], [0], [0], [1], [0, 0, 1, 1], [], []>} : vector<16x128xbf16>, vector<128x256xbf16>, vector<16x256xf32> -> vector<16x256xf32>
      %c0_55 = arith.constant 0 : index
      %c0_56 = arith.constant 0 : index
      %146 = vector.load %arg10[%c0_55, %c0_56] : memref<1x256xf32, #tpu.memory_space<vmem>>, vector<1x256xf32>
      %147 = vector.broadcast %146 : vector<1x256xf32> to vector<16x256xf32>
      %148 = arith.addf %145, %147 : vector<16x256xf32>
      %cst_57 = arith.constant 0.000000e+00 : f32
      %149 = vector.broadcast %cst_57 : f32 to vector<16x256xf32>
      %150 = arith.maximumf %148, %149 : vector<16x256xf32>
      %151 = arith.truncf %150 : vector<16x256xf32> to vector<16x256xbf16>
      %c0_58 = arith.constant 0 : index
      %c0_59 = arith.constant 0 : index
      %152 = vector.load %arg11[%c0_58, %c0_59] : memref<256x128xbf16, #tpu.memory_space<vmem>>, vector<256x128xbf16>
      %cst_60 = arith.constant dense<0.000000e+00> : vector<16x128xf32>
      %153 = tpu.matmul %151, %152, %cst_60 {dimension_numbers = #tpu.dot_dimension_numbers<[1], [0], [0], [1], [0, 0, 1, 1], [], []>} : vector<16x256xbf16>, vector<256x128xbf16>, vector<16x128xf32> -> vector<16x128xf32>
      %c0_61 = arith.constant 0 : index
      %c0_62 = arith.constant 0 : index
      %154 = vector.load %arg12[%c0_61, %c0_62] : memref<1x128xf32, #tpu.memory_space<vmem>>, vector<1x128xf32>
      %155 = vector.broadcast %154 : vector<1x128xf32> to vector<16x128xf32>
      %156 = arith.addf %153, %155 : vector<16x128xf32>
      %157 = arith.addf %142, %156 : vector<16x128xf32>
      %c0_63 = arith.constant 0 : index
      %c0_64 = arith.constant 0 : index
      %158 = vector.load %arg13[%c0_63, %c0_64] : memref<1x128xf32, #tpu.memory_space<vmem>>, vector<1x128xf32>
      %c0_65 = arith.constant 0 : index
      %c0_66 = arith.constant 0 : index
      %159 = vector.load %arg14[%c0_65, %c0_66] : memref<1x128xf32, #tpu.memory_space<vmem>>, vector<1x128xf32>
      %cst_67 = arith.constant dense<0.000000e+00> : vector<16xf32>
      %160 = vector.multi_reduction <add>, %157, %cst_67 [1] : vector<16x128xf32> to vector<16xf32>
      %161 = vector.shape_cast %160 : vector<16xf32> to vector<16x1xf32>
      %cst_68 = arith.constant 1.280000e+02 : f32
      %162 = vector.broadcast %cst_68 : f32 to vector<16x1xf32>
      %163 = arith.divf %161, %162 : vector<16x1xf32>
      %164 = vector.broadcast %163 : vector<16x1xf32> to vector<16x128xf32>
      %165 = arith.subf %157, %164 : vector<16x128xf32>
      %166 = arith.mulf %165, %165 : vector<16x128xf32>
      %cst_69 = arith.constant dense<0.000000e+00> : vector<16xf32>
      %167 = vector.multi_reduction <add>, %166, %cst_69 [1] : vector<16x128xf32> to vector<16xf32>
      %168 = vector.shape_cast %167 : vector<16xf32> to vector<16x1xf32>
      %cst_70 = arith.constant 1.280000e+02 : f32
      %169 = vector.broadcast %cst_70 : f32 to vector<16x1xf32>
      %170 = arith.divf %168, %169 : vector<16x1xf32>
      %171 = vector.broadcast %163 : vector<16x1xf32> to vector<16x128xf32>
      %172 = arith.subf %157, %171 : vector<16x128xf32>
      %cst_71 = arith.constant 9.99999974E-6 : f32
      %173 = vector.broadcast %cst_71 : f32 to vector<16x1xf32>
      %174 = arith.addf %170, %173 : vector<16x1xf32>
      %175 = math.rsqrt %174 : vector<16x1xf32>
      %176 = vector.broadcast %175 : vector<16x1xf32> to vector<16x128xf32>
      %177 = arith.mulf %172, %176 : vector<16x128xf32>
      %178 = vector.broadcast %158 : vector<1x128xf32> to vector<16x128xf32>
      %179 = arith.mulf %177, %178 : vector<16x128xf32>
      %180 = vector.broadcast %159 : vector<1x128xf32> to vector<16x128xf32>
      %181 = arith.addf %179, %180 : vector<16x128xf32>
      scf.yield %181 : vector<16x128xf32>
    }
    %c0_4 = arith.constant 0 : index
    %c0_5 = arith.constant 0 : index
    %c0_6 = arith.constant 0 : index
    %5 = vector.load %arg15[%c0_4, %c0_5, %c0_6] : memref<1x16x128xf32, #tpu.memory_space<vmem>>, vector<1x16x128xf32>
    %6 = vector.shape_cast %5 : vector<1x16x128xf32> to vector<16x128xf32>
    %7 = vector.shape_cast %4 : vector<16x128xf32> to vector<1x16x128xf32>
    tpu.vector_store %arg15[%c0_4, %c0_5, %c0_6], %7 {strides = array<i32>} : memref<1x16x128xf32, #tpu.memory_space<vmem>>, vector<1x16x128xf32>,
    return
  }
  func.func @transform_0(%arg0: i32) -> (i32, i32, i32) {
    %c0_i32 = arith.constant 0 : i32
    %c0_i32_0 = arith.constant 0 : i32
    %c0_i32_1 = arith.constant 0 : i32
    return %arg0, %c0_i32, %c0_i32_0 : i32, i32, i32
  }
  func.func @transform_1(%arg0: i32) -> (i32, i32) {
    %c0_i32 = arith.constant 0 : i32
    %c0_i32_0 = arith.constant 0 : i32
    %c0_i32_1 = arith.constant 0 : i32
    return %c0_i32, %c0_i32_0 : i32, i32
  }
  func.func @transform_2(%arg0: i32) -> (i32, i32) {
    %c0_i32 = arith.constant 0 : i32
    %c0_i32_0 = arith.constant 0 : i32
    %c0_i32_1 = arith.constant 0 : i32
    return %c0_i32, %c0_i32_0 : i32, i32
  }
  func.func @transform_3(%arg0: i32) -> (i32, i32) {
    %c0_i32 = arith.constant 0 : i32
    %c0_i32_0 = arith.constant 0 : i32
    %c0_i32_1 = arith.constant 0 : i32
    return %c0_i32, %c0_i32_0 : i32, i32
  }
  func.func @transform_4(%arg0: i32) -> (i32, i32, i32) {
    %c0_i32 = arith.constant 0 : i32
    %c0_i32_0 = arith.constant 0 : i32
    %c0_i32_1 = arith.constant 0 : i32
    %c0_i32_2 = arith.constant 0 : i32
    return %c0_i32, %c0_i32_0, %c0_i32_1 : i32, i32, i32
  }
  func.func @transform_5(%arg0: i32) -> (i32, i32) {
    %c0_i32 = arith.constant 0 : i32
    %c0_i32_0 = arith.constant 0 : i32
    %c0_i32_1 = arith.constant 0 : i32
    return %c0_i32, %c0_i32_0 : i32, i32
  }
  func.func @transform_6(%arg0: i32) -> (i32, i32) {
    %c0_i32 = arith.constant 0 : i32
    %c0_i32_0 = arith.constant 0 : i32
    %c0_i32_1 = arith.constant 0 : i32
    return %c0_i32, %c0_i32_0 : i32, i32
  }
  func.func @transform_7(%arg0: i32) -> (i32, i32) {
    %c0_i32 = arith.constant 0 : i32
    %c0_i32_0 = arith.constant 0 : i32
    %c0_i32_1 = arith.constant 0 : i32
    return %c0_i32, %c0_i32_0 : i32, i32
  }
  func.func @transform_8(%arg0: i32) -> (i32, i32) {
    %c0_i32 = arith.constant 0 : i32
    %c0_i32_0 = arith.constant 0 : i32
    %c0_i32_1 = arith.constant 0 : i32
    return %c0_i32, %c0_i32_0 : i32, i32
  }
  func.func @transform_9(%arg0: i32) -> (i32, i32) {
    %c0_i32 = arith.constant 0 : i32
    %c0_i32_0 = arith.constant 0 : i32
    %c0_i32_1 = arith.constant 0 : i32
    return %c0_i32, %c0_i32_0 : i32, i32
  }
  func.func @transform_10(%arg0: i32) -> (i32, i32) {
    %c0_i32 = arith.constant 0 : i32
    %c0_i32_0 = arith.constant 0 : i32
    %c0_i32_1 = arith.constant 0 : i32
    return %c0_i32, %c0_i32_0 : i32, i32
  }
  func.func @transform_11(%arg0: i32) -> (i32, i32) {
    %c0_i32 = arith.constant 0 : i32
    %c0_i32_0 = arith.constant 0 : i32
    %c0_i32_1 = arith.constant 0 : i32
    return %c0_i32, %c0_i32_0 : i32, i32
  }
  func.func @transform_12(%arg0: i32) -> (i32, i32) {
    %c0_i32 = arith.constant 0 : i32
    %c0_i32_0 = arith.constant 0 : i32
    %c0_i32_1 = arith.constant 0 : i32
    return %c0_i32, %c0_i32_0 : i32, i32
  }
  func.func @transform_13(%arg0: i32) -> (i32, i32) {
    %c0_i32 = arith.constant 0 : i32
    %c0_i32_0 = arith.constant 0 : i32
    %c0_i32_1 = arith.constant 0 : i32
    return %c0_i32, %c0_i32_0 : i32, i32
  }
  func.func @transform_14(%arg0: i32) -> (i32, i32, i32) {
    %c0_i32 = arith.constant 0 : i32
    %c0_i32_0 = arith.constant 0 : i32
    %c0_i32_1 = arith.constant 0 : i32
    return %arg0, %c0_i32, %c0_i32_0 : i32, i32, i32
  }
}

</mosaic_0001>

<bundles_post_ra>
// kernel: tpu_custom_call.1
= control target key start
LH: loop header
LB: loop body
LE: loop exit
PB: predicated region body
PF: predicated region fallthrough
CT: control target
= control target key end

     0   :  { %s3083_s0 = inlined_call_operand.hbm [shape: f32[2,16,128], index: 0, kind: input, shape index: {}]   ;;  %s3084_s1 = inlined_call_operand.hbm [shape: f32[16,16], index: 1, kind: input, shape index: {}]   ;;  %s3085_s2 = inlined_call_operand.hbm [shape: bf16[128,384], index: 2, kind: input, shape index: {}]   ;;  %s3086_s3 = inlined_call_operand.hbm [shape: f32[1,384], index: 3, kind: input, shape index: {}]   ;;  %s3087_s4 = inlined_call_operand.hbm [shape: bf16[4,32,128], index: 4, kind: input, shape index: {}]   ;;  %s3088_s5 = inlined_call_operand.vmem [shape: f32[1,128], index: 5, kind: input, shape index: {}]   ;;  %s3089_s6 = inlined_call_operand.vmem [shape: f32[1,128], index: 6, kind: input, shape index: {}]   ;;  %s3090_s7 = inlined_call_operand.vmem [shape: f32[1,128], index: 7, kind: input, shape index: {}]   ;;  %s3091_s8 = inlined_call_operand.hbm [shape: bf16[128,256], index: 8, kind: input, shape index: {}]   ;;  %s3092_s9 = inlined_call_operand.vmem [shape: f32[1,256], index: 9, kind: input, shape index: {}]   ;;  %s3093_s10 = inlined_call_operand.hbm [shape: bf16[256,128], index: 10, kind: input, shape index: {}]   ;;  %s3094_s11 = inlined_call_operand.vmem [shape: f32[1,128], index: 11, kind: input, shape index: {}]   ;;  %s3095_s12 = inlined_call_operand.vmem [shape: f32[1,128], index: 12, kind: input, shape index: {}]   ;;  %s3096_s13 = inlined_call_operand.vmem [shape: f32[1,128], index: 13, kind: input, shape index: {}]   ;;  %s3097_s14 = inlined_call_operand.hbm [shape: f32[2,16,128], index: 14, kind: output, shape index: {}]  }
   0x1   :  { %3101 = sst [smem:[#allocation21_spill]] %s3084_s1 }
   0x2   :  { %3102 = sst [smem:[#allocation22_spill]] %s3085_s2 }
   0x3   :  { %3103 = sst [smem:[#allocation23_spill]] %s3086_s3 }
   0x4   :  { %3104 = sst [smem:[#allocation24_spill]] %s3087_s4 }
   0x5   :  { %3105 = sst [smem:[#allocation25_spill]] %s3091_s8 }
   0x6   :  { %3106 = sst [smem:[#allocation26_spill]] %s3093_s10 }
   0x7   :  { %3107 = sst [smem:[#allocation27_spill]] %s3096_s13 }
   0x8   :  { %3108 = sst [smem:[#allocation28_spill]] %s3097_s14 }
   0x9   :  { %19 = vsyncpa [#allocation3], 0 }
   0xa   :  { %21 = vsyncpa [#allocation3 + $0x1], 0 }
   0xb   :  { %22 = vsyncpa [#allocation6], 0 }
   0xc   :  { %23 = vsyncpa [#allocation9], 0 }
   0xd   :  { %24 = vsyncpa [#allocation12], 0 }
   0xe   :  { %25 = vsyncpa [#allocation4], 0 }
   0xf   :  { %27 = vsyncpa [#allocation4 + $0x1], 0  ;;  %s2756_s29 = smov 0   ;;  %s2758_s30 = smov 0  }
  0x10   :  { %s2760_s15 = smov 0   ;;  %s2762_s16 = smov 0  }
  0x11 LB: > { %s3109_s1 = sld [smem:[#allocation21_spill]]  ;;  %s2780_s20 = sadd.s32 4294967295, %s2649_s16   ;;  %s2649_s16 = sphi %s2762_s16, %s3134_s16   ;;  %s2645_s15 = sphi %s2760_s15, %s3133_s15   ;;  %s2641_s30 = sphi %s2758_s30, %s3132_s30   ;;  %s2637_s29 = sphi %s2756_s29, %s3131_s29  }
  0x12   : > { %p1799_p0 = scmp.ge.s32.totalorder %s2649_s16, 1  ;;  %p54_p1 = scmp.eq.s32.totalorder %s2780_s20, 0 }
  0x13   : > { %p363_p2 = scmp.lt.s32.totalorder %s2649_s16, 3  ;;  %s2663_s22 = smov [#allocation5]  }
  0x14   : > { %s376_s23 = sshll.u32 %s2663_s22, 4  ;;  %s3111_s3 = sld [smem:[#allocation23_spill]]  ;;  %s377_s23 = int_to_ptr.vmem [resolvable:$true] %s376_s23 }
  0x15   : > { %p2785_p3 = pnand %p1799_p0, %p363_p2  ;;  %s3113_s8 = sld [smem:[#allocation25_spill]] }
  0x16   : > { %s2664_s22 = smov [#allocation8]   ;;  %s3099_s14 = smov 128  }
  0x17   : > { %s374_s19 = sshll.u32 %s3109_s1, 4  ;;  %p2186_p4 = pneg %p2785_p3  ;;  %s375_s19 = int_to_ptr.hbm [resolvable:$true] %s374_s19 }
  0x18   : > { %s405_s1 = sshll.u32 %s2664_s22, 4  ;;  %s3100_s13 = smov 8   ;;  %s406_s1 = int_to_ptr.vmem [resolvable:$true] %s405_s1 }
  0x19   : > { %p2797_p6 = pnand %p2186_p4, %p54_p1  ;;  %s3114_s2 = sld [smem:[#allocation22_spill]] }
  0x1a   : > { %s403_s26 = sshll.u32 %s3111_s3, 4  ;;  %s2667_s28 = smov [#allocation11]   ;;  %s404_s26 = int_to_ptr.hbm [resolvable:$true] %s403_s26 }
  0x1b   : > { %s437_s18 = sshll.u32 %s3113_s8, 4  ;;  %s439_s17 = sshll.u32 %s2667_s28, 4  ;;  %s438_s18 = int_to_ptr.hbm [resolvable:$true] %s437_s18  ;;  %s440_s17 = int_to_ptr.vmem [resolvable:$true] %s439_s17 }
  0x1c   : > { %2189 = dma.hbm_to_vmem [thread:$0]  (!%p2797_p6), %s375_s19, 256, %s377_s23, [#allocation6], %s3099_s14, %s3099_s14, %s3100_s13  }
  0x1d   : > { %2195 = dma.hbm_to_vmem [thread:$0]  (!%p2797_p6), %s404_s26, 48, %s406_s1, [#allocation9]  }
  0x1e   : > { %2201 = dma.hbm_to_vmem [thread:$0]  (!%p2797_p6), %s438_s18, 2048, %s440_s17, [#allocation12], %s3099_s14, %s3099_s14, %s3100_s13  }
  0x1f   : > { %s388_s3 = sshll.u32 %s3114_s2, 4  ;;  %s2668_s22 = smov [#allocation7]   ;;  %s389_s3 = int_to_ptr.hbm [resolvable:$true] %s388_s3 }
  0x20   : > { %s390_s19 = sshll.u32 %s2668_s22, 4  ;;  %s2669_s23 = smov 192   ;;  %s391_s19 = int_to_ptr.vmem [resolvable:$true] %s390_s19 }
  0x21   : > { %s2670_s1 = smov 12   ;;  %s3115_s4 = sld [smem:[#allocation24_spill]] }
  0x22   : > { %2192 = dma.hbm_to_vmem [thread:$0]  (!%p2797_p6), %s389_s3, 3072, %s391_s19, [#allocation6], %s2669_s23, %s2669_s23, %s2670_s1  }
  0x23   : > { %s2671_s28 = smov [#allocation10]   ;;  %s3116_s10 = sld [smem:[#allocation26_spill]] }
  0x24   : > { %s416_s2 = sshll.u32 %s2671_s28, 4  ;;  %s2672_s3 = smov 64   ;;  %s417_s2 = int_to_ptr.vmem [resolvable:$true] %s416_s2 }
  0x25   : > { %s2673_s19 = smov 4   ;;  %s2674_s23 = smov [#allocation13]  }
  0x26   : > { %s456_s1 = sshll.u32 %s2674_s23, 4  ;;  %s1798_s26 = sadd.s32 4294967294, %s2649_s16   ;;  %s457_s1 = int_to_ptr.vmem [resolvable:$true] %s456_s1 }
  0x27   : > { %s414_s25 = sshll.u32 %s3115_s4, 4  ;;  %s2833_s24 = sadd.s32 1, %s2649_s16   ;;  %s415_s25 = int_to_ptr.hbm [resolvable:$true] %s414_s25 }
  0x28   : > { %2198 = dma.hbm_to_vmem [thread:$0]  (!%p2797_p6), %s415_s25, 1024, %s417_s2, [#allocation9], %s2672_s3, %s2672_s3, %s2673_s19  }
  0x29   : > { %s454_s22 = sshll.u32 %s3116_s10, 4  ;;  %s37_s28 = ssub.s32 %s2649_s16, %s2833_s24  ;;  %s455_s22 = int_to_ptr.hbm [resolvable:$true] %s454_s22 }
  0x2a   : > { %2204 = dma.hbm_to_vmem [thread:$0]  (!%p2797_p6), %s455_s22, 2048, %s457_s1, [#allocation12], %s2672_s3, %s2672_s3, %s2673_s19  }
  0x2b   : > { %s40_s18 = sadd.s32 1, %s2645_s15  ;;  %p38_p7 = scmp.eq.s32.totalorder %s37_s28, 0 }
  0x2c   : > { %p47_p8 = scmp.ne.s32.totalorder %s2645_s15, %s2641_s30  ;;  %p48_p9 = scmp.eq.s32.totalorder %s2649_s16, 0 }
  0x2d   : > { %p53_p10 = scmp.ne.s32.totalorder %s2641_s30, %s2637_s29  ;;  %p350_p13 = scmp.eq.s32.totalorder %s2780_s20, 1 }
  0x2e   : > { %s2844_s2 = scalar_select %p38_p7, %s2645_s15, %s40_s18  }
  0x2f   : > { %p2846_p11 = por %p48_p9, %p47_p8  ;;  %p2852_p12 = por %p54_p1, %p53_p10 }
  0x30   : > { %3117 = sst [smem:[#allocation20_spill]] %s2844_s2  ;;  %p356_p0 = scmp.eq.s32.totalorder %s1798_s26, 1 }
  0x31   : > { %p2219_p2 = scmp.lt.s32.totalorder %s2649_s16, 2  ;;  %s479_s17 = sand.u32 1, %s2645_s15  }
  0x32   : > { %p2859_p4 = por %p350_p13, %p47_p8  ;;  %p2863_p6 = por %p356_p0, %p53_p10 }
  0x33   : > { %s1807_s19 = sshll.u32 %s479_s17, 4  ;;  %s2092_s23 = sshll.u32 %s2649_s16, 4 }
  0x34   : > { %s488_s18 = scalar_lea.hbm %s3083_s0, %s2092_s23  ;;  %s483_s14 = scalar_lea.vmem [#allocation2], %s1807_s19 }
  0x35   : > { %s491_s13 = sshll.u32 %s483_s14, 4  ;;  %s489_s4 = sshll.u32 %s488_s18, 4  ;;  %s492_s13 = int_to_ptr.vmem [resolvable:$true] %s491_s13  ;;  %s490_s4 = int_to_ptr.hbm [resolvable:$true] %s489_s4 }
  0x36   : > { %p2873_p7 = pnand %p2219_p2, %p2846_p11  ;;  %s480_s8 = scalar_lea.sflag [#allocation3], %s479_s17 }
  0x37   : > { %s2529_s10 = sshra.s32 %s490_s4, 4  ;;  %s2536_s23 = scalar_lea.hbm %s3083_s0, 32  ;;  %s2530_s10 = int_to_ptr.hbm [resolvable:$true] %s2529_s10 }
  0x38   : > { %s2531_s2 = scalar_lea.hbm %s2530_s10, 16  ;;  %p2533_p9 = pneg %p2873_p7 }
  0x39   : > { %p2532_p8 = scmp.ne.s32.totalorder %s2530_s10, %s2531_s2  ;;  %p2537_p11 = scmp.lt.s32.totalorder %s2530_s10, %s3083_s0 }
  0x3a   : > { %p2538_p0 = scmp.lt.s32.totalorder %s2536_s23, %s2531_s2 }
  0x3b   : > { %p2534_p10 = pnand %p2533_p9, %p2532_p8 }
  0x3c   : > { %p2539_p2 = por %p2538_p0, %p2537_p11 }
  0x3d   : > { %p2535_p13 = pneg %p2534_p10 }
  0x3f   : > { %p2540_p5 = pnand %p2539_p2, %p2535_p13 }
  0x41   : > { %2543 = shalt.err (!%p2540_p5)
}
  0x42   : > { %s3123_s17 = smov 8   ;;  %s3124_s28 = smov 128  }
  0x43   : > { %2208 = dma.hbm_to_vmem [thread:$0]  (!%p2873_p7), %s490_s4, 256, %s492_s13, %s480_s8, %s3124_s28, %s3124_s28, %s3123_s17  }
  0x44   : > { %503 = sbr.rel (%p2785_p3) target bundleno = 2075 (0x81b), region = 76  ;;  %s2893_s18 = sand.u32 (!%p2785_p3), 1, %s2641_s30  }
  0x45   : > { %s1811_s10 = sshll.u32 (!%p2785_p3), %s2893_s18, 4  ;;  %s506_s2 = scalar_lea.sflag (!%p2785_p3), [#allocation3], %s2893_s18 }
  0x46   : > { %s509_s19 = scalar_lea.vmem (!%p2785_p3), [#allocation2], %s1811_s10 }
  0x49   : > { %2616 = dma.done.wait (%p2852_p12), %s506_s2, 256  }
  0x4a   : > { %2618 = vsyncadd (%p2852_p12), %s506_s2, 4294967040 }
  0x4b   : > { %2620 = dma.done.wait (%p54_p1), [#allocation6], 3328  }
  0x4c   : > { %2622 = vsyncadd (%p54_p1), [#allocation6], 4294963968 }
  0x4d   : > { %2624 = dma.done.wait (%p54_p1), [#allocation9], 1072  }
  0x4e   : > { %2626 = vsyncadd (%p54_p1), [#allocation9], 4294966224 }
  0x4f   : > { %2628 = dma.done.wait (%p54_p1), [#allocation12], 4096  }
  0x50   : > { %2630 = vsyncadd (%p54_p1), [#allocation12], 4294963200  ;;  %v586_v0 = vld [vmem:[%s509_s19] sm:$0xff]   ;;  %v587_v1 = vld [vmem:[%s509_s19 + $0x8] sm:$0xff]   ;;  %s2917_s4 = scalar_lea.vmem [#allocation14], %s1811_s10  ;;  %s2923_s8 = smov 0  }
  0x51   : > { %v2913_v2 = vld [vmem:[#allocation5] sm:$0xff]  ;;  %v2915_v3 = vld [vmem:[#allocation5 + $0x8] sm:$0xff] }
  0x52 LB: >> { %v1905_v4 = vld [vmem:[#allocation7 + $0xa8] sm:$0xf]  ;;  %v2115_v5 = vld [vmem:[#allocation7 + $0xb0] sm:$0xf0]  ;;  %v2114_v6 = vld [vmem:[#allocation7 + $0xac] sm:$0xf]  ;;  %s2661_s8 = sphi %s2923_s8, %s595_s8   ;;  %v2657_v0 = vphi %v586_v0, %v3127_v0   ;;  %v2653_v1 = vphi %v587_v1, %v3126_v1  }
  0x53   : >> { %v1906_v7 = vor.u32 %v2115_v5, %v1905_v4  ;;  %v1907_v8 = vld [vmem:[#allocation7 + $0xb4] sm:$0xf0]  ;;  %v1893_v9 = vld [vmem:[#allocation7 + $0x90] sm:$0xf]  ;;  %v2112_v10 = vld [vmem:[#allocation7 + $0x98] sm:$0xf0] }
  0x54   : >> { %v1910_v11 = vor.u32 %v2114_v6, %v1907_v8  ;;  %v2111_v12 = vld [vmem:[#allocation7 + $0x94] sm:$0xf]  ;;  %v1895_v13 = vld [vmem:[#allocation7 + $0x9c] sm:$0xf0]  ;;  %v1894_v14 = vor.u32 %v2112_v10, %v1893_v9  ;;  %v1881_v16 = vld [vmem:[#allocation7 + $0x78] sm:$0xf]  ;;  %v598_v9 = vpack.c.bf16 %v2653_v1, %v2657_v0 }
  0x55   : >> { %767 = vmatpush.bf16.msra.mxu0 %v1906_v7  ;;  %v1898_v15 = vor.u32 %v2111_v12, %v1895_v13  ;;  %v2109_v17 = vld [vmem:[#allocation7 + $0x80] sm:$0xf0]  ;;  %v2108_v18 = vld [vmem:[#allocation7 + $0x7c] sm:$0xf]  ;;  %v1883_v19 = vld [vmem:[#allocation7 + $0x84] sm:$0xf0] }
  0x56   : >> { %781 = vmatpush.bf16.msra.mxu1 %v1910_v11  ;;  %v1882_v20 = vor.u32 %v2109_v17, %v1881_v16  ;;  %v1886_v21 = vor.u32 %v2108_v18, %v1883_v19  ;;  %v1869_v22 = vld [vmem:[#allocation7 + $0x60] sm:$0xf]  ;;  %v2106_v23 = vld [vmem:[#allocation7 + $0x68] sm:$0xf0]  ;;  %v2105_v24 = vld [vmem:[#allocation7 + $0x64] sm:$0xf] }
  0x57   : >> { %v1871_v25 = vld [vmem:[#allocation7 + $0x6c] sm:$0xf0]  ;;  %v1870_v27 = vor.u32 %v2106_v23, %v1869_v22  ;;  %v2116_v28 = vld [vmem:[#allocation7 + $0xb8] sm:$0xf0]  ;;  %v1901_v29 = vld [vmem:[#allocation7 + $0x98] sm:$0xf] }
  0x58   : >> { %v1913_v26 = vld [vmem:[#allocation7 + $0xb0] sm:$0xf]  ;;  %v2113_v30 = vld [vmem:[#allocation7 + $0xa0] sm:$0xf0]  ;;  %v1874_v31 = vor.u32 %v2105_v24, %v1871_v25  ;;  %v1857_v32 = vld [vmem:[#allocation7 + $0x48] sm:$0xf] }
  0x59   : >> { %768 = vmatpush.bf16.msra.mxu0 %v1894_v14  ;;  %v2103_v33 = vld [vmem:[#allocation7 + $0x50] sm:$0xf0]  ;;  %v1914_v34 = vor.u32 %v2116_v28, %v1913_v26  ;;  %v2102_v35 = vld [vmem:[#allocation7 + $0x4c] sm:$0xf]  ;;  %v1859_v36 = vld [vmem:[#allocation7 + $0x54] sm:$0xf0]  ;;  %v1902_v38 = vor.u32 %v2113_v30, %v1901_v29 }
  0x5a   : >> { %782 = vmatpush.bf16.msra.mxu1 %v1898_v15  ;;  %v1845_v37 = vld [vmem:[#allocation7 + $0x30] sm:$0xf]  ;;  %v1858_v39 = vor.u32 %v2103_v33, %v1857_v32  ;;  %v2100_v40 = vld [vmem:[#allocation7 + $0x38] sm:$0xf0]  ;;  %v1889_v41 = vld [vmem:[#allocation7 + $0x80] sm:$0xf]  ;;  %v1862_v43 = vor.u32 %v2102_v35, %v1859_v36 }
  0x5b   : >> { %795 = vmatpush.bf16.msra.mxu2 %v1914_v34  ;;  %v2110_v42 = vld [vmem:[#allocation7 + $0x88] sm:$0xf0]  ;;  %v2099_v44 = vld [vmem:[#allocation7 + $0x34] sm:$0xf]  ;;  %v1847_v45 = vld [vmem:[#allocation7 + $0x3c] sm:$0xf0]  ;;  %v1846_v47 = vor.u32 %v2100_v40, %v1845_v37 }
  0x5c   : >> { %v1890_v46 = vor.u32 %v2110_v42, %v1889_v41  ;;  %v1877_v48 = vld [vmem:[#allocation7 + $0x68] sm:$0xf]  ;;  %v2107_v49 = vld [vmem:[#allocation7 + $0x70] sm:$0xf0]  ;;  %v1850_v50 = vor.u32 %v2099_v44, %v1847_v45  ;;  %v1833_v51 = vld [vmem:[#allocation7 + $0x18] sm:$0xf] }
  0x5d   : >> { %769 = vmatpush.bf16.msra.mxu0 %v1882_v20  ;;  %v2097_v52 = vld [vmem:[#allocation7 + $0x20] sm:$0xf0]  ;;  %v2096_v53 = vld [vmem:[#allocation7 + $0x1c] sm:$0xf]  ;;  %v1835_v54 = vld [vmem:[#allocation7 + $0x24] sm:$0xf0]  ;;  %v1878_v55 = vor.u32 %v2107_v49, %v1877_v48 }
  0x5e   : >> { %783 = vmatpush.bf16.msra.mxu1 %v1886_v21  ;;  %v1834_v56 = vor.u32 %v2097_v52, %v1833_v51  ;;  %v1865_v57 = vld [vmem:[#allocation7 + $0x50] sm:$0xf]  ;;  %v2104_v58 = vld [vmem:[#allocation7 + $0x58] sm:$0xf0]  ;;  %v1838_v59 = vor.u32 %v2096_v53, %v1835_v54  ;;  %v1821_v60 = vld [vmem:[#allocation7] sm:$0xf] }
  0x5f   : >> { %796 = vmatpush.bf16.msra.mxu2 %v1902_v38  ;;  %v2094_v61 = vld [vmem:[#allocation7 + $0x8] sm:$0xf0]  ;;  %v2093_v62 = vld [vmem:[#allocation7 + $0x4] sm:$0xf]  ;;  %v1823_v63 = vld [vmem:[#allocation7 + $0xc] sm:$0xf0]  ;;  %v1866_v4 = vor.u32 %v2104_v58, %v1865_v57 }
  0x60   : >> { %v1822_v5 = vor.u32 %v2094_v61, %v1821_v60  ;;  %v1853_v6 = vld [vmem:[#allocation7 + $0x38] sm:$0xf]  ;;  %v2101_v7 = vld [vmem:[#allocation7 + $0x40] sm:$0xf0]  ;;  %v1826_v8 = vor.u32 %v2093_v62, %v1823_v63  ;;  %v1841_v11 = vld [vmem:[#allocation7 + $0x20] sm:$0xf] }
  0x61   : >> { %770 = vmatpush.bf16.msra.mxu0 %v1870_v27  ;;  %v1854_v10 = vor.u32 %v2101_v7, %v1853_v6  ;;  %v2098_v12 = vld [vmem:[#allocation7 + $0x28] sm:$0xf0]  ;;  %v1829_v14 = vld [vmem:[#allocation7 + $0x8] sm:$0xf]  ;;  %v2095_v15 = vld [vmem:[#allocation7 + $0x10] sm:$0xf0] }
  0x62   : >> { %784 = vmatpush.bf16.msra.mxu1 %v1874_v31  ;;  %v1842_v13 = vor.u32 %v2098_v12, %v1841_v11  ;;  %v1830_v16 = vor.u32 %v2095_v15, %v1829_v14  ;;  %v631_v18 = vld [vmem:[#allocation8] sm:$0x7]  ;;  %vm812_vm0 = vcmask 261120   ;;  %s2675_s13 = smov 96   ;;  %s2676_s21 = smov 32   ;;  %vm833_vm1 = vcmask 130048  }
  0x63   : >> { %797 = vmatpush.bf16.msra.mxu2 %v1890_v46  ;;  %v634_v20 = vperm.slane %v631_v18, 1  ;;  %v633_v24 = vperm.slane %v631_v18, 0  ;;  %v635_v32 = vperm.slane %v631_v18, 2  ;;  %s2677_s27 = smov 64   ;;  %v2118_v45 = vld [vmem:[#allocation10 + $0x8] sm:$0xff]  ;;  %v2117_v46 = vld [vmem:[#allocation10] sm:$0xff] }
  0x64   : >> { %s3125_s14 = sld [smem:[#allocation27_spill]]  ;;  %s595_s8 = sadd.s32 1, %s2661_s8  }
  0x65   : >> { %771 = vmatpush.bf16.msra.mxu0 %v1858_v39  ;;  %p592_p1 = scmp.ge.s32.totalorder %s595_s8, 3  }
  0x66   : >> { %785 = vmatpush.bf16.msra.mxu1 %v1862_v43  ;;  %s2157_s23 = sshll.u32 (%p592_p1), %s2780_s20, 4  ;;  %s3128_s17 = sld [smem:[#allocation28_spill]] (%p592_p1) }
  0x67   : >> { %798 = vmatpush.bf16.msra.mxu2 %v1878_v55  ;;  %s1654_s10 = sshll.u32 (%p592_p1), %s2917_s4, 4  ;;  %s1642_s19 = scalar_lea.sflag (%p592_p1), [#allocation4], %s2893_s18  ;;  %s1655_s10 = int_to_ptr.vmem [resolvable:$true] %s1654_s10 }
  0x69   : >> { %772 = vmatpush.bf16.msra.mxu0 %v1846_v47 }
  0x6a   : >> { %786 = vmatpush.bf16.msra.mxu1 %v1850_v50 }
  0x6b   : >> { %799 = vmatpush.bf16.msra.mxu2 %v1866_v4 }
  0x6c   : > { %s1653_s28 = scalar_lea.hbm (%p592_p1), %s3128_s17, %s2157_s23  ;;  %s2579_s20 = scalar_lea.hbm (%p592_p1), %s3128_s17, 32 }
  0x6d   : >> { %773 = vmatpush.bf16.msra.mxu0 %v1834_v56  ;;  %s1656_s2 = sshll.u32 (%p592_p1), %s1653_s28, 4  ;;  %s1657_s2 = int_to_ptr.hbm [resolvable:$true] %s1656_s2 }
  0x6e   : >> { %787 = vmatpush.bf16.msra.mxu1 %v1838_v59  ;;  %s2573_s8 = sshra.s32 (%p592_p1), %s1657_s2, 4  ;;  %s2574_s8 = int_to_ptr.hbm [resolvable:$true] %s2573_s8 }
  0x6f   : >> { %800 = vmatpush.bf16.msra.mxu2 %v1854_v10  ;;  %p2580_p7 = scmp.lt.s32.totalorder (%p592_p1), %s2574_s8, %s3128_s17 }
  0x71   : >> { %774 = vmatpush.bf16.msra.mxu0 %v1822_v5 }
  0x72   : >> { %788 = vmatpush.bf16.msra.mxu1 %v1826_v8 }
  0x73   : >> { %801 = vmatpush.bf16.msra.mxu2 %v1842_v13 }
  0x74   : >> { %775 = vmatmul.bf16.vlgmr.msra.gmra.mxu0 %v598_v9 }
  0x75   : >> { %789 = vmatmul.bf16.vlgmr.msra.gmra.mxu1 %v598_v9 }
  0x77   : >> { %802 = vmatpush.bf16.msra.mxu2 %v1830_v16 }
  0x7a   : >> { %803 = vmatmul.bf16.vlgmr.msra.gmra.mxu2 %v598_v9 }
  0x7b   : >> { %1005 = vmatpush.bf16.msrb.mxu2 %v2118_v45 }
  0x7f   : >> { %1006 = vmatpush.bf16.msrb.mxu2 %v2117_v46 }
  0xf1   : >> { %v776_v19 = vpop.f32.mrf.mxu0 }
  0xf2   : >> { %v790_v17 = vpop.f32.mrf.mxu1  ;;  %v777_v28 = vadd.f32 %v776_v19, %v633_v24 }
  0xf3   : >> { %v791_v22 = vadd.f32 %v790_v17, %v634_v20 }
  0xf9   : >> { %v778_v26 = vpop.f32.mrf.mxu0 }
  0xfa   : >> { %v792_v21 = vpop.f32.mrf.mxu1  ;;  %v779_v29 = vadd.f32 %v778_v26, %v633_v24 }
  0xfb   : >> { %v793_v23 = vadd.f32 %v792_v21, %v634_v20 }
  0xfc   : >> { %v809_v31 = vpack.c.bf16 %v779_v29, %v777_v28 }
  0xfd   : >> { %v810_v25 = vpack.c.bf16 %v793_v23, %v791_v22  ;;  %v804_v30 = vpop.f32.mrf.mxu2 }
  0xfe   : >> { %v805_v33 = vadd.f32 %v804_v30, %v635_v32 }
  0xff   : >> { %883 = vrot.lane.b32.xlu2 %v810_v25, %s2675_s13  ;;  %v817_v27 = vsel %vm812_vm0, %v810_v25, 0 }
 0x100   : >> { %826 = vmatpush.bf16.xpose.msra.mxu3 %v817_v27 }
 0x105   : >> { %v806_v34 = vpop.f32.mrf.mxu2 }
 0x106   : >> { %v807_v35 = vadd.f32 %v806_v34, %v635_v32 }
 0x107   : >> { %880 = vrot.lane.b32.xlu2 %v809_v31, %s2675_s13  ;;  %1915 = vmatmul.msk.bf16.vlgmr.msra.gmra.mxu3 %vm812_vm0, %v809_v31 }
 0x108   : >> { %v2940_v36 = vpack.c.bf16 %v807_v35, %v805_v33 }
 0x10a   : >> { %863 = vmatpush.bf16.msrb.mxu3 %v2940_v36 }
 0x10f   : >> { %1117 = vrot.lane.b32.xlu2 %v809_v31, %s2676_s21 }
 0x117   : >> { %1013 = vrot.lane.b32.xlu2 %v809_v31, %s2677_s27 }
 0x159   : >> { %v884_v37 = vpop.permute.xlu2 %883 }
 0x15a   : >> { %v889_v38 = vsel %vm812_vm0, %v884_v37, 0 }
 0x15b   : >> { %898 = vmatpush.bf16.xpose.msra.mxu3 %v889_v38 }
 0x161   : >> { %v881_v60 = vpop.permute.xlu2 %880 }
 0x169   : >> { %v1118_v4 = vpop.permute.xlu2 %1117 }
 0x171   : >> { %v1014_v13 = vpop.permute.xlu2 %1013 }
 0x18a   : >> { %v828_v39 = vpop.f32.mrf.mxu3 }
 0x18b   : >> { %v829_v40 = vadd.f32 %v828_v39, %v2913_v2 }
 0x18d   : >> { %v834_v41 = vsel %vm833_vm1, %v829_v40, -inf }
 0x18e   : >> { %835 = vmax.xlane.f32.xlu0 %v834_v41 }
 0x192   : >> { %v830_v42 = vpop.f32.mrf.mxu3 }
 0x193   : >> { %v831_v43 = vadd.f32 %v830_v42, %v2915_v3 }
 0x195   : >> { %v837_v44 = vsel %vm833_vm1, %v831_v43, -inf }
 0x196   : >> { %838 = vmax.xlane.f32.xlu0 %v837_v44 }
 0x1aa   : >> { %1119 = vrot.lane.b32.xlu0 %v810_v25, %s2676_s21 }
 0x201   : >> { %v836_v47 = vpop.xlane.xlu0 %835 }
 0x202   : >> { %v840_v48 = vsub.f32 %v829_v40, %v836_v47 }
 0x204   : >> { %v842_v49 = vmul.f32 1.442695, %v840_v48  ;;  %v2120_v48 = vld [vmem:[#allocation10 + $0x18] sm:$0xff] }
 0x205   : >> { %976 = vmatpush.bf16.msrb.mxu1 %v2120_v48 }
 0x206   : >> { %2307 = vpow2.f32 %v842_v49 }
 0x209   : >> { %v839_v50 = vpop.xlane.xlu0 %838 }
 0x20a   : >> { %v841_v51 = vsub.f32 %v831_v43, %v839_v50 }
 0x20c   : >> { %v2308_v52 = vpop.eup %2307  ;;  %v844_v53 = vmul.f32 1.442695, %v841_v51  ;;  %v2119_v51 = vld [vmem:[#allocation10 + $0x10] sm:$0xff] }
 0x20d   : >> { %v846_v54 = vsel %vm833_vm1, %v2308_v52, 0.0  ;;  %977 = vmatpush.bf16.msrb.mxu1 %v2119_v51  ;;  %v2301_v51 = vld [vmem:[%s3088_s5] ss:$0 sm:$0xff] }
 0x20e   : >> { %2309 = vpow2.f32 %v844_v53  ;;  %847 = vadd.xlane.f32.xlu1 %v846_v54 }
 0x214   : >> { %v2310_v55 = vpop.eup %2309 }
 0x215   : >> { %v849_v56 = vsel %vm833_vm1, %v2310_v55, 0.0  ;;  %v852_v57 = vpack.c.bf16 %v2310_v55, %v2308_v52 }
 0x216   : >> { %850 = vadd.xlane.f32.xlu1 %v849_v56 }
 0x217   : >> { %1916 = vmatmul.msk.bf16.vlgmr.msrb.gmra.mxu3 %vm833_vm1, %v852_v57 }
 0x21c   : >> { %v1120_v58 = vpop.permute.xlu0 %1119 }
 0x21d   : >> { %v1125_v59 = vsel %vm812_vm0, %v1120_v58, 0 }
 0x21e   : >> { %1134 = vmatpush.bf16.xpose.msra.mxu2 %v1125_v59 }
 0x227   : >> { %1917 = vmatmul.msk.bf16.vlgmr.msra.gmra.mxu3 %vm812_vm0, %v881_v60 }
 0x22f   : >> { %1015 = vrot.lane.b32.xlu1 %v810_v25, %s2677_s27 }
 0x237   : >> { %925 = vrot.lane.b32.xlu1 %v2940_v36, %s2675_s13  ;;  %s2575_s13 = scalar_lea.hbm (%p592_p1), %s2574_s8, 16 }
 0x238   : > { %p2576_p3 = scmp.ne.s32.totalorder (%p592_p1), %s2574_s8, %s2575_s13  ;;  %p2581_p8 = scmp.lt.s32.totalorder (%p592_p1), %s2579_s20, %s2575_s13 }
 0x23a   : > { %p2577_p5 = pnand (%p592_p1), %p2576_p3, %p2859_p4  ;;  %p2582_p9 = por (%p592_p1), %p2581_p8, %p2580_p7 }
 0x23c   : > { %p2578_p12 = pneg (%p592_p1), %p2577_p5 }
 0x23e   : > { %p2583_p10 = pnand (%p592_p1), %p2582_p9, %p2578_p12 }
 0x281   : >> { %v848_v61 = vpop.xlane.xlu1 %847 }
 0x282   : >> { %2311 = vrcp.f32 %v848_v61 }
 0x288   : >> { %v2312_v5 = vpop.eup %2311 }
 0x289   : >> { %v851_v62 = vpop.xlane.xlu1 %850 }
 0x28a   : >> { %2313 = vrcp.f32 %v851_v62 }
 0x290   : >> { %v2314_v7 = vpop.eup %2313 }
 0x29a   : >> { %v865_v63 = vpop.f32.mrf.mxu3 }
 0x29b   : >> { %v872_v10 = vmul.f32 %v2312_v5, %v865_v63 }
 0x2a1   : >> { %v1016_v6 = vpop.permute.xlu1 %1015 }
 0x2a2   : >> { %v1021_v8 = vsel %vm812_vm0, %v1016_v6, 0  ;;  %v867_v9 = vpop.f32.mrf.mxu3 }
 0x2a3   : >> { %v873_v11 = vmul.f32 %v2314_v7, %v867_v9  ;;  %1030 = vmatpush.bf16.xpose.msrb.mxu3 %v1021_v8 }
 0x2a5   : >> { %v874_v12 = vpack.c.bf16 %v873_v11, %v872_v10 }
 0x2a7   : >> { %1936 = vmatmul.msk.bf16.vlgmr.msrb.gmra.mxu2 %vm812_vm0, %v874_v12 }
 0x2a9   : >> { %v926_v14 = vpop.permute.xlu1 %925 }
 0x2aa   : >> { %v900_v15 = vpop.f32.mrf.mxu3  ;;  %938 = vmatpush.bf16.msrb.mxu0 %v926_v14  ;;  %1937 = vmatmul.msk.bf16.vlgmr.msrb.gmra.mxu3 %vm812_vm0, %v1014_v13 }
 0x2ab   : >> { %v901_v16 = vadd.f32 %v900_v15, %v2913_v2 }
 0x2ad   : >> { %v905_v17 = vsel %vm833_vm1, %v901_v16, -inf }
 0x2ae   : >> { %906 = vmax.xlane.f32.xlu2 %v905_v17 }
 0x2b2   : >> { %v902_v18 = vpop.f32.mrf.mxu3 }
 0x2b3   : >> { %v903_v19 = vadd.f32 %v902_v18, %v2915_v3 }
 0x2b5   : >> { %v908_v20 = vsel %vm833_vm1, %v903_v19, -inf }
 0x2b6   : >> { %909 = vmax.xlane.f32.xlu0 %v908_v20 }
 0x2b7   : >> { %1948 = vmatmul.msk.bf16.vlgmr.msra.gmra.mxu2 %vm812_vm0, %v1118_v4 }
 0x321   : >> { %v907_v21 = vpop.xlane.xlu2 %906 }
 0x322   : >> { %v911_v22 = vsub.f32 %v901_v16, %v907_v21  ;;  %v2122_v21 = vld [vmem:[#allocation10 + $0x28] sm:$0xff] }
 0x323   : >> { %1107 = vmatpush.bf16.msra.mxu1 %v2122_v21  ;;  %v2137_v21 = vld [vmem:[#allocation11 + $0x64] sm:$0xf] }
 0x324   : >> { %v913_v23 = vmul.f32 1.442695, %v911_v22  ;;  %v2121_v22 = vld [vmem:[#allocation10 + $0x20] sm:$0xff] }
 0x326   : >> { %2315 = vpow2.f32 %v913_v23  ;;  %v2124_v23 = vld [vmem:[#allocation10 + $0x38] sm:$0xff] }
 0x327   : >> { %1108 = vmatpush.bf16.msra.mxu1 %v2121_v22 }
 0x329   : >> { %v910_v24 = vpop.xlane.xlu0 %909 }
 0x32a   : >> { %v912_v25 = vsub.f32 %v903_v19, %v910_v24  ;;  %v2967_v26 = vpop.f32.mrf.mxu2  ;;  %v2123_v24 = vld [vmem:[#allocation10 + $0x30] sm:$0xff] }
 0x32c   : >> { %v915_v27 = vmul.f32 1.442695, %v912_v25  ;;  %v2316_v32 = vpop.eup %2315 }
 0x32d   : >> { %v1032_v28 = vpop.f32.mrf.mxu3  ;;  %v917_v45 = vsel %vm833_vm1, %v2316_v32, 0.0 }
 0x32e   : >> { %2317 = vpow2.f32 %v915_v27  ;;  %v1033_v29 = vadd.f32 %v1032_v28, %v2913_v2 }
 0x330   : >> { %v1037_v30 = vsel %vm833_vm1, %v1033_v29, -inf }
 0x331   : >> { %1038 = vmax.xlane.f32.xlu0 %v1037_v30 }
 0x332   : >> { %v2971_v31 = vpop.f32.mrf.mxu2 }
 0x334   : >> { %v2318_v33 = vpop.eup %2317 }
 0x335   : >> { %v1034_v34 = vpop.f32.mrf.mxu3  ;;  %v923_v35 = vpack.c.bf16 %v2318_v33, %v2316_v32  ;;  %v920_v46 = vsel %vm833_vm1, %v2318_v33, 0.0 }
 0x336   : >> { %v1035_v37 = vadd.f32 %v1034_v34, %v2915_v3 }
 0x337   : >> { %1918 = vmatmul.msk.bf16.vlgmr.msrb.gmra.mxu0 %vm833_vm1, %v923_v35 }
 0x338   : >> { %v1040_v38 = vsel %vm833_vm1, %v1035_v37, -inf }
 0x339   : >> { %1041 = vmax.xlane.f32.xlu2 %v1040_v38 }
 0x33a   : >> { %v1136_v39 = vpop.f32.mrf.mxu2 }
 0x33b   : >> { %v1137_v40 = vadd.f32 %v1136_v39, %v2913_v2 }
 0x33d   : >> { %v1141_v41 = vsel %vm833_vm1, %v1137_v40, -inf }
 0x33e   : >> { %1142 = vmax.xlane.f32.xlu1 %v1141_v41 }
 0x342   : >> { %v1138_v42 = vpop.f32.mrf.mxu2 }
 0x343   : >> { %v1139_v43 = vadd.f32 %v1138_v42, %v2915_v3 }
 0x345   : >> { %1160 = vrot.lane.b32.xlu0 %v2940_v36, %s2676_s21  ;;  %v1144_v44 = vsel %vm833_vm1, %v1139_v43, -inf }
 0x346   : >> { %1145 = vmax.xlane.f32.xlu2 %v1144_v44  ;;  %918 = vadd.xlane.f32.xlu1 %v917_v45 }
 0x34e   : >> { %921 = vadd.xlane.f32.xlu1 %v920_v46 }
 0x35e   : >> { %1056 = vrot.lane.b32.xlu2 %v2940_v36, %s2677_s27 }
 0x3a4   : >> { %v1039_v47 = vpop.xlane.xlu0 %1038 }
 0x3a5   : >> { %v1043_v49 = vsub.f32 %v1033_v29, %v1039_v47 }
 0x3a7   : >> { %v1045_v50 = vmul.f32 1.442695, %v1043_v49 }
 0x3a9   : >> { %2319 = vpow2.f32 %v1045_v50 }
 0x3ac   : >> { %v1042_v52 = vpop.xlane.xlu2 %1041 }
 0x3ad   : >> { %v1044_v53 = vsub.f32 %v1035_v37, %v1042_v52 }
 0x3af   : >> { %v2320_v54 = vpop.eup %2319  ;;  %v1047_v55 = vmul.f32 1.442695, %v1044_v53 }
 0x3b0   : >> { %v1049_v56 = vsel %vm833_vm1, %v2320_v54, 0.0 }
 0x3b1   : >> { %2321 = vpow2.f32 %v1047_v55  ;;  %v1143_v57 = vpop.xlane.xlu1 %1142  ;;  %1050 = vadd.xlane.f32.xlu0 %v1049_v56 }
 0x3b2   : >> { %v1147_v58 = vsub.f32 %v1137_v40, %v1143_v57 }
 0x3b4   : >> { %v1149_v59 = vmul.f32 1.442695, %v1147_v58  ;;  %v940_v8 = vpop.f32.mrf.mxu0 }
 0x3b6   : >> { %2323 = vpow2.f32 %v1149_v59 }
 0x3b7   : >> { %v2322_v36 = vpop.eup %2321  ;;  %v1161_v60 = vpop.permute.xlu0 %1160 }
 0x3b8   : >> { %1173 = vmatpush.bf16.msra.mxu3 %v1161_v60  ;;  %v1052_v61 = vsel %vm833_vm1, %v2322_v36, 0.0  ;;  %v1055_v11 = vpack.c.bf16 %v2322_v36, %v2320_v54 }
 0x3b9   : >> { %v1146_v62 = vpop.xlane.xlu2 %1145  ;;  %v919_v63 = vpop.xlane.xlu1 %918  ;;  %1053 = vadd.xlane.f32.xlu1 %v1052_v61  ;;  %v2678_v61 = vmov 128.0  }
 0x3ba   : >> { %v1148_v4 = vsub.f32 %v1139_v43, %v1146_v62 }
 0x3bc   : >> { %v2324_v5 = vpop.eup %2323  ;;  %v1151_v6 = vmul.f32 1.442695, %v1148_v4  ;;  %v942_v17 = vpop.f32.mrf.mxu0 }
 0x3bd   : >> { %v1153_v7 = vsel %vm833_vm1, %v2324_v5, 0.0 }
 0x3be   : >> { %2325 = vpow2.f32 %v1151_v6  ;;  %1154 = vadd.xlane.f32.xlu2 %v1153_v7 }
 0x3bf   : >> { %2327 = vrcp.f32 %v919_v63 }
 0x3c1   : >> { %v1057_v9 = vpop.permute.xlu2 %1056  ;;  %v922_v10 = vpop.xlane.xlu1 %921 }
 0x3c2   : >> { %2329 = vrcp.f32 %v922_v10  ;;  %1069 = vmatpush.bf16.msra.mxu0 %v1057_v9 }
 0x3c4   : >> { %v2326_v12 = vpop.eup %2325 }
 0x3c5   : >> { %v1159_v13 = vpack.c.bf16 %v2326_v12, %v2324_v5  ;;  %1938 = vmatmul.msk.bf16.vlgmr.msra.gmra.mxu0 %vm833_vm1, %v1055_v11  ;;  %v1156_v14 = vsel %vm833_vm1, %v2326_v12, 0.0  ;;  %v2328_v15 = vpop.eup %2327 }
 0x3c6   : >> { %1157 = vadd.xlane.f32.xlu1 %v1156_v14  ;;  %v947_v18 = vmul.f32 %v2328_v15, %v940_v8  ;;  %1211 = vmatpush.bf16.msrb.mxu0 %v2124_v23  ;;  %v2140_v14 = vld [vmem:[#allocation11 + $0x74] sm:$0xf0]  ;;  %v2139_v15 = vld [vmem:[#allocation11 + $0x74] sm:$0xf]  ;;  %v2011_v23 = vld [vmem:[#allocation11 + $0x68] sm:$0xf0] }
 0x3c7   : >> { %1949 = vmatmul.msk.bf16.vlgmr.msra.gmra.mxu3 %vm833_vm1, %v1159_v13  ;;  %v2017_v13 = vld [vmem:[#allocation11 + $0x70] sm:$0xf] }
 0x3c8   : >> { %v2330_v16 = vpop.eup %2329 }
 0x3c9   : >> { %v948_v19 = vmul.f32 %v2330_v16, %v942_v17  ;;  %v2018_v16 = vor.u32 %v2140_v14, %v2017_v13  ;;  %v2019_v17 = vld [vmem:[#allocation11 + $0x78] sm:$0xf0]  ;;  %v2146_v14 = vld [vmem:[#allocation13 + $0x28] sm:$0xff] }
 0x3ca   : >> { %1212 = vmatpush.bf16.msrb.mxu0 %v2123_v24  ;;  %v2014_v24 = vor.u32 %v2137_v21, %v2011_v23 }
 0x3cb   : >> { %v949_v20 = vpack.c.bf16 %v948_v19, %v947_v18  ;;  %v2022_v18 = vor.u32 %v2139_v15, %v2019_v17  ;;  %v2009_v19 = vld [vmem:[#allocation11 + $0x60] sm:$0xf]  ;;  %v2154_v15 = vld [vmem:[#allocation13 + $0x68] sm:$0xff] }
 0x3cd   : >> { %1927 = vmatmul.msk.bf16.vlgmr.msrb.gmra.mxu1 %vm812_vm0, %v949_v20  ;;  %1405 = vmatpush.bf16.msrb.mxu2 %v2022_v18  ;;  %v2138_v20 = vld [vmem:[#allocation11 + $0x64] sm:$0xf0]  ;;  %v2145_v18 = vld [vmem:[#allocation13 + $0x20] sm:$0xff] }
 0x3ce   : >> { %1391 = vmatpush.bf16.msrb.mxu1 %v2018_v16  ;;  %v2010_v22 = vor.u32 %v2138_v20, %v2009_v19 }
 0x3d1   : >> { %1406 = vmatpush.bf16.msrb.mxu2 %v2014_v24 }
 0x3d2   : >> { %1392 = vmatpush.bf16.msrb.mxu1 %v2010_v22 }
 0x424   : >> { %v1051_v25 = vpop.xlane.xlu0 %1050 }
 0x425   : >> { %2331 = vrcp.f32 %v1051_v25  ;;  %v2001_v25 = vld [vmem:[#allocation11 + $0x50] sm:$0xf] }
 0x42b   : >> { %v2332_v29 = vpop.eup %2331 }
 0x42c   : >> { %v1054_v27 = vpop.xlane.xlu1 %1053 }
 0x42d   : >> { %2333 = vrcp.f32 %v1054_v27  ;;  %v2136_v27 = vld [vmem:[#allocation11 + $0x54] sm:$0xf0] }
 0x431   : >> { %v1155_v30 = vpop.xlane.xlu2 %1154 }
 0x432   : >> { %2335 = vrcp.f32 %v1155_v30  ;;  %v2003_v30 = vld [vmem:[#allocation11 + $0x58] sm:$0xf0] }
 0x433   : >> { %v2334_v32 = vpop.eup %2333 }
 0x438   : >> { %v2336_v40 = vpop.eup %2335 }
 0x439   : >> { %v1158_v33 = vpop.xlane.xlu1 %1157 }
 0x43a   : >> { %2337 = vrcp.f32 %v1158_v33  ;;  %v1993_v33 = vld [vmem:[#allocation11 + $0x40] sm:$0xf] }
 0x43b   : >> { %2339 = vrcp.f32 %v2678_v61  ;;  %v1963_v61 = vld [vmem:[#allocation11 + $0x8] sm:$0xf0] }
 0x440   : >> { %v2338_v41 = vpop.eup %2337 }
 0x441   : >> { %v2340_v62 = vpop.eup %2339 }
 0x442   : >> { %v1071_v28 = vpop.f32.mrf.mxu0  ;;  %v1236_v63 = vmul.f32 128.0, %v2340_v62  ;;  %vm1240_vm2 = vweird.f32 %v2340_v62 }
 0x443   : >> { %v1078_v35 = vmul.f32 %v2332_v29, %v1071_v28  ;;  %v2135_v28 = vld [vmem:[#allocation11 + $0x54] sm:$0xf]  ;;  %v2002_v29 = vor.u32 %v2136_v27, %v2001_v25 }
 0x444   : >> { %v1237_v4 = vsub.f32 1.0, %v1236_v63 }
 0x445   : >> { %1393 = vmatpush.bf16.msrb.mxu1 %v2002_v29  ;;  %v2302_v29 = vld [vmem:[%s3089_s6] ss:$0 sm:$0xff] }
 0x446   : >> { %v1238_v5 = vmul.f32 %v2340_v62, %v1237_v4 }
 0x448   : >> { %v1239_v6 = vadd.f32 %v2340_v62, %v1238_v5  ;;  %v2148_v5 = vld [vmem:[#allocation13 + $0x38] sm:$0xff] }
 0x449   : >> { %1557 = vmatpush.bf16.msrb.mxu3 %v2148_v5 }
 0x44a   : >> { %v1073_v34 = vpop.f32.mrf.mxu0  ;;  %v1175_v38 = vpop.f32.mrf.mxu3  ;;  %v3002_v7 = vsel %vm1240_vm2, %v2340_v62, %v1239_v6  ;;  %v2156_v6 = vld [vmem:[#allocation13 + $0x78] sm:$0xff] }
 0x44b   : >> { %v1079_v37 = vmul.f32 %v2334_v32, %v1073_v34  ;;  %v1182_v43 = vmul.f32 %v2336_v40, %v1175_v38  ;;  %v979_v46 = vpop.f32.mrf.mxu1  ;;  %v2006_v32 = vor.u32 %v2135_v28, %v2003_v30  ;;  %v2134_v34 = vld [vmem:[#allocation11 + $0x44] sm:$0xf0]  ;;  %v1995_v38 = vld [vmem:[#allocation11 + $0x48] sm:$0xf0]  ;;  %v1985_v40 = vld [vmem:[#allocation11 + $0x30] sm:$0xf]  ;;  %1571 = vmatpush.bf16.msra.mxu0 %v2156_v6 }
 0x44c   : >> { %v1009_v49 = vadd.f32 %v2967_v26, %v979_v46  ;;  %v1977_v46 = vld [vmem:[#allocation11 + $0x20] sm:$0xf] }
 0x44d   : >> { %v1080_v39 = vpack.c.bf16 %v1079_v37, %v1078_v35  ;;  %1407 = vmatpush.bf16.msrb.mxu2 %v2006_v32  ;;  %v2133_v35 = vld [vmem:[#allocation11 + $0x44] sm:$0xf]  ;;  %v1994_v37 = vor.u32 %v2134_v34, %v1993_v33 }
 0x44f   : >> { %1947 = vmatmul.msk.bf16.vlgmr.msra.gmra.mxu1 %vm812_vm0, %v1080_v39  ;;  %v1998_v39 = vor.u32 %v2133_v35, %v1995_v38  ;;  %v2303_v35 = vld [vmem:[%s3090_s7] ss:$0 sm:$0xff] }
 0x450   : >> { %1394 = vmatpush.bf16.msrb.mxu1 %v1994_v37 }
 0x451   : >> { %1408 = vmatpush.bf16.msrb.mxu2 %v1998_v39 }
 0x452   : >> { %v1177_v42 = vpop.f32.mrf.mxu3 }
 0x453   : >> { %v1183_v44 = vmul.f32 %v2338_v41, %v1177_v42  ;;  %v981_v47 = vpop.f32.mrf.mxu1  ;;  %v2132_v41 = vld [vmem:[#allocation11 + $0x34] sm:$0xf0]  ;;  %v2131_v42 = vld [vmem:[#allocation11 + $0x34] sm:$0xf] }
 0x454   : >> { %v1011_v56 = vadd.f32 %v2971_v31, %v981_v47  ;;  %v2130_v47 = vld [vmem:[#allocation11 + $0x24] sm:$0xf0] }
 0x455   : >> { %v1184_v45 = vpack.c.bf16 %v1183_v44, %v1182_v43  ;;  %v1986_v43 = vor.u32 %v2132_v41, %v1985_v40  ;;  %v1987_v44 = vld [vmem:[#allocation11 + $0x38] sm:$0xf0]  ;;  %v2153_v41 = vld [vmem:[#allocation13 + $0x60] sm:$0xff] }
 0x457   : >> { %1958 = vmatmul.msk.bf16.vlgmr.msrb.gmra.mxu0 %vm812_vm0, %v1184_v45  ;;  %v1990_v45 = vor.u32 %v2131_v42, %v1987_v44  ;;  %1395 = vmatpush.bf16.msrb.mxu1 %v1986_v43  ;;  %v2143_v42 = vld [vmem:[#allocation13 + $0x10] sm:$0xff]  ;;  %v2152_v43 = vld [vmem:[#allocation13 + $0x58] sm:$0xff] }
 0x458   : >> { %v2151_v44 = vld [vmem:[#allocation13 + $0x50] sm:$0xff] }
 0x459   : >> { %1409 = vmatpush.bf16.msrb.mxu2 %v1990_v45  ;;  %v2141_v45 = vld [vmem:[#allocation13] sm:$0xff] }
 0x4cc   : >> { %v1110_v48 = vpop.f32.mrf.mxu1 }
 0x4cd   : >> { %v1115_v50 = vadd.f32 %v1110_v48, %v1009_v49  ;;  %v2129_v48 = vld [vmem:[#allocation11 + $0x24] sm:$0xf]  ;;  %v1978_v49 = vor.u32 %v2130_v47, %v1977_v46  ;;  %v2150_v46 = vld [vmem:[#allocation13 + $0x48] sm:$0xff] }
 0x4ce   : >> { %v2149_v47 = vld [vmem:[#allocation13 + $0x40] sm:$0xff] }
 0x4cf   : >> { %1396 = vmatpush.bf16.msrb.mxu1 %v1978_v49 }
 0x4d4   : >> { %v1214_v52 = vpop.f32.mrf.mxu0  ;;  %v1112_v55 = vpop.f32.mrf.mxu1 }
 0x4d5   : >> { %v1219_v53 = vadd.f32 %v1214_v52, %v1115_v50  ;;  %v1116_v58 = vadd.f32 %v1112_v55, %v1011_v56  ;;  %v1979_v50 = vld [vmem:[#allocation11 + $0x28] sm:$0xf0]  ;;  %v1969_v52 = vld [vmem:[#allocation11 + $0x10] sm:$0xf]  ;;  %v1971_v56 = vld [vmem:[#allocation11 + $0x18] sm:$0xf0] }
 0x4d7   : >> { %v1225_v54 = vadd.f32 %v2301_v51, %v1219_v53  ;;  %v2128_v53 = vld [vmem:[#allocation11 + $0x14] sm:$0xf0] }
 0x4d8   : >> { %v1970_v55 = vor.u32 %v2128_v53, %v1969_v52 }
 0x4d9   : >> { %v1227_v57 = vadd.f32 %v2657_v0, %v1225_v54  ;;  %v2127_v54 = vld [vmem:[#allocation11 + $0x14] sm:$0xf] }
 0x4da   : >> { %1397 = vmatpush.bf16.msrb.mxu1 %v1970_v55 }
 0x4db   : >> { %1231 = vadd.xlane.f32.xlu1 %v1227_v57 }
 0x4dc   : >> { %v1216_v59 = vpop.f32.mrf.mxu0 }
 0x4dd   : >> { %v1220_v36 = vadd.f32 %v1216_v59, %v1116_v58  ;;  %v1961_v58 = vld [vmem:[#allocation11] sm:$0xf]  ;;  %v2126_v59 = vld [vmem:[#allocation11 + $0x4] sm:$0xf0] }
 0x4df   : >> { %v1226_v60 = vadd.f32 %v2301_v51, %v1220_v36  ;;  %v1982_v51 = vor.u32 %v2129_v48, %v1979_v50  ;;  %v2125_v36 = vld [vmem:[#allocation11 + $0x4] sm:$0xf]  ;;  %v1305_v48 = vld [vmem:[%s3092_s9] sm:$0x3] }
 0x4e0   : >> { %v1966_v63 = vor.u32 %v2125_v36, %v1963_v61  ;;  %v1307_v50 = vperm.slane %v1305_v48, 0 }
 0x4e1   : >> { %v1228_v26 = vadd.f32 %v2653_v1, %v1226_v60  ;;  %1410 = vmatpush.bf16.msrb.mxu2 %v1982_v51 }
 0x4e3   : >> { %1233 = vadd.xlane.f32.xlu1 %v1228_v26 }
 0x54e   : >> { %v1232_v31 = vpop.xlane.xlu1 %1231 }
 0x54f   : >> { %v1242_v0 = vmul.f32 %v3002_v7, %v1232_v31 }
 0x551   : >> { %v3005_v8 = vsub.f32 %v1227_v57, %v1242_v0  ;;  %v1974_v57 = vor.u32 %v2127_v54, %v1971_v56  ;;  %v1308_v54 = vperm.slane %v1305_v48, 1 }
 0x553   : >> { %v1246_v9 = vmul.f32 %v3005_v8, %v3005_v8  ;;  %1411 = vmatpush.bf16.msrb.mxu2 %v1974_v57 }
 0x555   : >> { %1248 = vadd.xlane.f32.xlu1 %v1246_v9  ;;  %v2147_v9 = vld [vmem:[#allocation13 + $0x30] sm:$0xff] }
 0x556   : >> { %v1234_v1 = vpop.xlane.xlu1 %1233  ;;  %1558 = vmatpush.bf16.msrb.mxu3 %v2147_v9 }
 0x557   : >> { %v1243_v10 = vmul.f32 %v3002_v7, %v1234_v1  ;;  %1412 = vmatpush.bf16.msrb.mxu2 %v1966_v63  ;;  %v2155_v1 = vld [vmem:[#allocation13 + $0x70] sm:$0xff]  ;;  %v2304_v63 = vld [vmem:[%s3094_s11] ss:$0 sm:$0xff] }
 0x558   : >> { %1572 = vmatpush.bf16.msra.mxu0 %v2155_v1 }
 0x559   : >> { %v3010_v11 = vsub.f32 %v1228_v26, %v1243_v10  ;;  %v1962_v26 = vor.u32 %v2126_v59, %v1961_v58 }
 0x55a   : >> { %1559 = vmatpush.bf16.msrb.mxu3 %v2146_v14 }
 0x55b   : >> { %v1247_v12 = vmul.f32 %v3010_v11, %v3010_v11  ;;  %1398 = vmatpush.bf16.msrb.mxu1 %v1962_v26 }
 0x55c   : >> { %1573 = vmatpush.bf16.msra.mxu0 %v2154_v15 }
 0x55d   : >> { %1250 = vadd.xlane.f32.xlu1 %v1247_v12 }
 0x55e   : >> { %1560 = vmatpush.bf16.msrb.mxu3 %v2145_v18 }
 0x560   : >> { %1574 = vmatpush.bf16.msra.mxu0 %v2153_v41 }
 0x564   : >> { %1575 = vmatpush.bf16.msra.mxu0 %v2152_v43 }
 0x568   : >> { %1576 = vmatpush.bf16.msra.mxu0 %v2151_v44 }
 0x56c   : >> { %1577 = vmatpush.bf16.msra.mxu0 %v2150_v46 }
 0x570   : >> { %1578 = vmatpush.bf16.msra.mxu0 %v2149_v47 }
 0x5c8   : >> { %v1249_v60 = vpop.xlane.xlu1 %1248 }
 0x5c9   : >> { %v1252_v62 = vmul.f32 %v1249_v60, %v3002_v7 }
 0x5cb   : >> { %v1254_v4 = vadd.f32 1e-05, %v1252_v62 }
 0x5cd   : >> { %2341 = vrsqrt.f32 %v1254_v4  ;;  %vm1262_vm4 = vweird.f32 %v1254_v4 }
 0x5d0   : >> { %v1251_v31 = vpop.xlane.xlu1 %1250 }
 0x5d1   : >> { %v1253_v0 = vmul.f32 %v1251_v31, %v3002_v7 }
 0x5d3   : >> { %v2342_v10 = vpop.eup %2341  ;;  %v1255_v12 = vadd.f32 1e-05, %v1253_v0 }
 0x5d4   : >> { %v1257_v13 = vmul.f32 %v2342_v10, %v1254_v4  ;;  %vm1263_vm3 = vweird.f32 %v2342_v10 }
 0x5d5   : >> { %2343 = vrsqrt.f32 %v1255_v12  ;;  %vm1264_vm5 = vmor %vm1262_vm4, %vm1263_vm3  ;;  %vm1272_vm7 = vweird.f32 %v1255_v12 }
 0x5d6   : >> { %v1258_v16 = vmul.f32 %v2342_v10, %v1257_v13 }
 0x5d8   : >> { %v1259_v17 = vmul.f32 0.5, %v1258_v16 }
 0x5da   : >> { %v1260_v19 = vsub.f32 1.5, %v1259_v17 }
 0x5db   : >> { %v2344_v20 = vpop.eup %2343 }
 0x5dc   : >> { %v1261_v21 = vmul.f32 %v2342_v10, %v1260_v19  ;;  %v1267_v22 = vmul.f32 %v2344_v20, %v1255_v12  ;;  %vm1273_vm6 = vweird.f32 %v2344_v20 }
 0x5dd   : >> { %vm1274_vm8 = vmor %vm1272_vm7, %vm1273_vm6 }
 0x5de   : >> { %v1268_v23 = vmul.f32 %v2344_v20, %v1267_v22  ;;  %v1265_v24 = vsel %vm1264_vm5, %v2342_v10, %v1261_v21 }
 0x5df   : >> { %v1276_v28 = vmul.f32 %v1265_v24, %v3005_v8  ;;  %v2144_v8 = vld [vmem:[#allocation13 + $0x18] sm:$0xff] }
 0x5e0   : >> { %v1269_v25 = vmul.f32 0.5, %v1268_v23  ;;  %1561 = vmatpush.bf16.msrb.mxu3 %v2144_v8 }
 0x5e1   : >> { %v1281_v34 = vmul.f32 %v2302_v29, %v1276_v28 }
 0x5e2   : >> { %v1270_v27 = vsub.f32 1.5, %v1269_v25 }
 0x5e3   : >> { %v1286_v38 = vadd.f32 %v2303_v35, %v1281_v34 }
 0x5e4   : >> { %v1271_v30 = vmul.f32 %v2344_v20, %v1270_v27  ;;  %1562 = vmatpush.bf16.msrb.mxu3 %v2143_v42 }
 0x5e6   : >> { %v1275_v32 = vsel %vm1274_vm8, %v2344_v20, %v1271_v30 }
 0x5e7   : >> { %v1277_v33 = vmul.f32 %v1275_v32, %v3010_v11  ;;  %v2142_v11 = vld [vmem:[#allocation13 + $0x8] sm:$0xff] }
 0x5e8   : >> { %1563 = vmatpush.bf16.msrb.mxu3 %v2142_v11 }
 0x5e9   : >> { %v1282_v37 = vmul.f32 %v2302_v29, %v1277_v33 }
 0x5eb   : >> { %v1287_v39 = vadd.f32 %v2303_v35, %v1282_v37 }
 0x5ec   : >> { %1564 = vmatpush.bf16.msrb.mxu3 %v2141_v45 }
 0x5ed   : >> { %v1288_v40 = vpack.c.bf16 %v1287_v39, %v1286_v38 }
 0x5ef   : >> { %1399 = vmatmul.bf16.vlgmr.msrb.gmra.mxu1 %v1288_v40  ;;  %1413 = vmatmul.bf16.vlgmr.msrb.gmra.mxu2 %v1288_v40 }
 0x66c   : >> { %v1400_v49 = vpop.f32.mrf.mxu1 }
 0x66d   : >> { %v1401_v52 = vadd.f32 %v1400_v49, %v1307_v50 }
 0x66f   : >> { %v1419_v56 = vmax.f32 %v1401_v52, 0.0 }
 0x672   : >> { %v1414_v51 = vpop.f32.mrf.mxu2 }
 0x673   : >> { %v1415_v58 = vadd.f32 %v1414_v51, %v1308_v54 }
 0x674   : >> { %v1402_v53 = vpop.f32.mrf.mxu1 }
 0x675   : >> { %v1403_v55 = vadd.f32 %v1402_v53, %v1307_v50  ;;  %v1420_v26 = vmax.f32 %v1415_v58, 0.0 }
 0x677   : >> { %v1421_v57 = vmax.f32 %v1403_v55, 0.0 }
 0x679   : >> { %v1423_v59 = vpack.c.bf16 %v1421_v57, %v1419_v56 }
 0x67a   : >> { %v1416_v36 = vpop.f32.mrf.mxu2 }
 0x67b   : >> { %v1417_v60 = vadd.f32 %v1416_v36, %v1308_v54  ;;  %1565 = vmatmul.bf16.vlgmr.msrb.gmra.mxu3 %v1423_v59 }
 0x67d   : >> { %v1422_v61 = vmax.f32 %v1417_v60, 0.0 }
 0x67f   : >> { %v1424_v62 = vpack.c.bf16 %v1422_v61, %v1420_v26 }
 0x681   : >> { %1579 = vmatmul.bf16.vlgmr.msra.gmra.mxu0 %v1424_v62 }
 0x6fe   : >> { %v1566_v4 = vpop.f32.mrf.mxu3  ;;  %v1580_v5 = vpop.f32.mrf.mxu0 }
 0x6ff   : >> { %v1567_v6 = vadd.f32 %v2304_v63, %v1566_v4 }
 0x701   : >> { %v1581_v31 = vadd.f32 %v1580_v5, %v1567_v6 }
 0x703   : >> { %v1585_v0 = vadd.f32 %v1581_v31, %v1286_v38 }
 0x705   : >> { %1589 = vadd.xlane.f32.xlu0 %v1585_v0 }
 0x706   : >> { %v1568_v9 = vpop.f32.mrf.mxu3  ;;  %v1582_v10 = vpop.f32.mrf.mxu0 }
 0x707   : >> { %v1569_v1 = vadd.f32 %v2304_v63, %v1568_v9 }
 0x709   : >> { %v1583_v12 = vadd.f32 %v1582_v10, %v1569_v1 }
 0x70b   : >> { %v1586_v13 = vadd.f32 %v1583_v12, %v1287_v39  ;;  %v2305_v39 = vld [vmem:[%s3095_s12] ss:$0 sm:$0xff] }
 0x70d   : >> { %1591 = vadd.xlane.f32.xlu2 %v1586_v13 }
 0x778   : >> { %v1590_v14 = vpop.xlane.xlu0 %1589 }
 0x779   : >> { %v1593_v15 = vmul.f32 %v1590_v14, %v3002_v7 }
 0x77b   : >> { %v1595_v16 = vsub.f32 %v1585_v0, %v1593_v15 }
 0x77d   : >> { %v1597_v17 = vmul.f32 %v1595_v16, %v1595_v16 }
 0x77f   : >> { %1599 = vadd.xlane.f32.xlu1 %v1597_v17 }
 0x780   : >> { %v1592_v18 = vpop.xlane.xlu2 %1591 }
 0x781   : >> { %v1594_v19 = vmul.f32 %v1592_v18, %v3002_v7 }
 0x783   : >> { %v1596_v20 = vsub.f32 %v1586_v13, %v1594_v19 }
 0x785   : >> { %v1598_v21 = vmul.f32 %v1596_v20, %v1596_v20 }
 0x787   : >> { %1601 = vadd.xlane.f32.xlu0 %v1598_v21 }
 0x7f2   : >> { %v1600_v22 = vpop.xlane.xlu1 %1599 }
 0x7f3   : >> { %v1603_v23 = vmul.f32 %v1600_v22, %v3002_v7 }
 0x7f5   : >> { %v1605_v24 = vadd.f32 1e-05, %v1603_v23 }
 0x7f7   : >> { %2345 = vrsqrt.f32 %v1605_v24  ;;  %vm1613_vm10 = vweird.f32 %v1605_v24 }
 0x7fa   : >> { %v1602_v25 = vpop.xlane.xlu0 %1601 }
 0x7fb   : >> { %v1604_v27 = vmul.f32 %v1602_v25, %v3002_v7  ;;  %v2306_v7 = vld [vmem:[%s3125_s14] ss:$0 sm:$0xff] }
 0x7fd   : >> { %v2346_v28 = vpop.eup %2345  ;;  %v1606_v29 = vadd.f32 1e-05, %v1604_v27 }
 0x7fe   : >> { %v1608_v30 = vmul.f32 %v2346_v28, %v1605_v24  ;;  %vm1614_vm9 = vweird.f32 %v2346_v28 }
 0x7ff   : >> { %2347 = vrsqrt.f32 %v1606_v29  ;;  %vm1615_vm11 = vmor %vm1613_vm10, %vm1614_vm9  ;;  %vm1623_vm13 = vweird.f32 %v1606_v29 }
 0x800   : >> { %v1609_v32 = vmul.f32 %v2346_v28, %v1608_v30 }
 0x802   : >> { %v1610_v33 = vmul.f32 0.5, %v1609_v32 }
 0x804   : >> { %v1611_v34 = vsub.f32 1.5, %v1610_v33 }
 0x805   : >> { %v2348_v35 = vpop.eup %2347 }
 0x806   : >> { %v1612_v37 = vmul.f32 %v2346_v28, %v1611_v34  ;;  %v1618_v38 = vmul.f32 %v2348_v35, %v1606_v29  ;;  %vm1624_vm12 = vweird.f32 %v2348_v35 }
 0x807   : >> { %vm1625_vm14 = vmor %vm1623_vm13, %vm1624_vm12 }
 0x808   : >> { %v1616_v40 = vsel %vm1615_vm11, %v2346_v28, %v1612_v37  ;;  %v1619_v8 = vmul.f32 %v2348_v35, %v1618_v38 }
 0x809   : >> { %v1627_v41 = vmul.f32 %v1616_v40, %v1595_v16 }
 0x80a   : >> { %v1620_v42 = vmul.f32 0.5, %v1619_v8 }
 0x80b   : >> { %v1632_v43 = vmul.f32 %v2305_v39, %v1627_v41 }
 0x80c   : >> { %v1621_v11 = vsub.f32 1.5, %v1620_v42 }
 0x80d   : >> { %v1637_v44 = vadd.f32 %v2306_v7, %v1632_v43  }
 0x80e   : >> { %v1622_v45 = vmul.f32 %v2348_v35, %v1621_v11 }
 0x80f   : >> { %v3127_v0 = vmov %v1637_v44  ;;  %1639 = vst [vmem:[%s2917_s4] sm:$0xff] (%p592_p1), %v1637_v44 }
 0x810   : >> { %v1626_v46 = vsel %vm1625_vm14, %v2348_v35, %v1622_v45 }
 0x811   : >> { %v1628_v47 = vmul.f32 %v1626_v46, %v1596_v20 }
 0x813   : >> { %v1633_v48 = vmul.f32 %v2305_v39, %v1628_v47  ;;  %594 = sbr.rel (!%p592_p1) target bundleno = 82 (0x52), region = 155 }
 0x815   : >> { %v1638_v49 = vadd.f32 %v2306_v7, %v1633_v48  }
 0x817   : >> { %v3126_v1 = vmov %v1638_v49  ;;  %1640 = vst [vmem:[%s2917_s4 + $0x8] sm:$0xff] (%p592_p1), %v1638_v49 }
 0x818   : > { %2586 = shalt.err (!%p2583_p10)
}
 0x819   : > { %s2679_s18 = smov 128   ;;  %s2680_s4 = smov 8  }
 0x81a   : > { %2184 = dma.vmem_to_hbm [thread:$0]  (%p2859_p4), %s1655_s10, 256, %s1657_s2, %s1642_s19, %s2679_s18, %s2679_s18, %s2680_s4  }
 0x81b PF: > { %s1671_s23 = sand.u32 1, %s2637_s29   ;;  %p3129_p13 = scmp.ge.s32.totalorder %s2649_s16, 2 }
 0x81c   : > { %s1672_s1 = scalar_lea.sflag [#allocation4], %s1671_s23 }
 0x81d   : > { %p2210_p11 = pnand %p3129_p13, %p2863_p6 }
 0x81f   : > { %p2211_p0 = pneg %p2210_p11 }
 0x821   : > { %2632 = dma.done.wait (%p2211_p0), %s1672_s1, 256  }
 0x822   : > { %2634 = vsyncadd (%p2211_p0), %s1672_s1, 4294967040  ;;  %s3130_s25 = sld [smem:[#allocation20_spill]]  ;;  %p30_p2 = scmp.ge.s32.totalorder %s2833_s24, 4  }
 0x823   : > { %s3131_s29 = smov %s2641_s30  ;;  %s3132_s30 = smov %s2645_s15 }
 0x824   : > { %s3134_s16 = smov %s2833_s24  ;;  %32 = sbr.rel (!%p30_p2) target bundleno = 17 (0x11), region = 166 }
 0x828   : > { %s3133_s15 = smov %s3130_s25 }
 0x829   :  { %1678 = vsyncpa [#allocation3], 1 }
 0x82a   :  { %1680 = vsyncpa [#allocation3 + $0x1], 1 }
 0x82b   :  { %1681 = vsyncpa [#allocation6], 1 }
 0x82c   :  { %1682 = vsyncpa [#allocation9], 1 }
 0x82d   :  { %1683 = vsyncpa [#allocation12], 1 }
 0x82e   :  { %1684 = vsyncpa [#allocation4], 1 }
 0x82f   :  { %1686 = vsyncpa [#allocation4 + $0x1], 1 }

</bundles_post_ra>
